<compile_context>
chip_gen: v6e
topology: v6e:2x2x1
jax: 0.10.0
libtpu: 0.0.40
codegen_flags: <defaults>
</compile_context>

<pallas_src>
import jax
import jax.numpy as jnp
import numpy as np
from jax import lax
from jax.experimental import pallas as pl
from jax.experimental.pallas import tpu as pltpu

EPS = 1e-5
# Tap order matches the (kh, kw) raster order of the 3x3 kernel.
TAPS = tuple((dh, dw) for dh in (-1, 0, 1) for dw in (-1, 0, 1))


def _make_kernel(C, B, HW, W, stacked, compute_dtype):
    L = B * HW

    def kernel(x_ref, w1_ref, w2_ref, m_ref, seg_ref, segT_ref, gavg_ref,
               g1_ref, b1_ref, g2_ref, b2_ref, out_ref):
        x = x_ref[...]                                    # (C, L), input dtype (residual)

        def conv3x3(v, w_ref):
            """3x3 'same' conv over B lane-concatenated samples -> (C, L) f32."""
            planes = []
            for t, (dh, dw) in enumerate(TAPS):
                # rolled[:, q] == v[:, q + dh*W + dw]; out-of-image / cross-sample
                # positions are zeroed by the precomputed tap mask.
                shift = (-(dh * W + dw)) % L
                p = v if shift == 0 else pltpu.roll(v, shift, 1)
                if (dh, dw) != (0, 0):
                    p = p * m_ref[t]                      # (1, L) broadcast over C
                planes.append(p)
            if stacked:
                rhs = jnp.concatenate(planes, axis=0)     # (9C, L) contraction operand
                return jnp.dot(w_ref[...], rhs, preferred_element_type=jnp.float32)
            # C not sublane-tile aligned: 9 accumulated dots (taps kept separate).
            acc = None
            for t in range(9):
                term = jnp.dot(w_ref[t], planes[t], preferred_element_type=jnp.float32)
                acc = term if acc is None else acc + term
            return acc                                    # (C, L) f32

        def gnorm(h, gamma_ref, beta_ref):
            """Per-sample GroupNorm (+ per-group affine) of (C, L) f32."""
            s = jnp.dot(h, seg_ref[...], preferred_element_type=jnp.float32)       # (C, B) sums
            sq = jnp.dot(h * h, seg_ref[...], preferred_element_type=jnp.float32)  # (C, B) sumsqs
            mean = jnp.dot(gavg_ref[...], s, preferred_element_type=jnp.float32)   # (C, B) group mean
            ex2 = jnp.dot(gavg_ref[...], sq, preferred_element_type=jnp.float32)   # (C, B) group E[x^2]
            var = jnp.maximum(ex2 - mean * mean, 0.0)     # clamp f32 cancellation
            inv = lax.rsqrt(var + EPS)
            scale = inv * gamma_ref[...]                  # (C, B)
            shift = beta_ref[...] - mean * scale          # (C, B)
            # Broadcast back to (C, L) through the segment matrix: pure MXU, no relayout.
            return (h * jnp.dot(scale, segT_ref[...], preferred_element_type=jnp.float32)
                    + jnp.dot(shift, segT_ref[...], preferred_element_type=jnp.float32))

        h1 = jnp.maximum(gnorm(conv3x3(x.astype(compute_dtype), w1_ref),
                                g1_ref, b1_ref), 0.0)
        h2 = gnorm(conv3x3(h1.astype(compute_dtype), w2_ref), g2_ref, b2_ref)
        out = jnp.maximum(h2 + x.astype(jnp.float32), 0.0)  # residual stays f32
        out_ref[...] = out.astype(out_ref.dtype)

    return kernel


def basic_block_forward(x_nchw, params, cpg, *, samples_per_step=None,
                        compute_dtype=jnp.float32, out_dtype=None):
    """Fused BasicBlock forward (stride=1, downsample=None, GroupNorm path).

    x_nchw: (N, C, H, W); params = (w1, g1, b1, w2, g2, b2) with torch layouts
    ((C, C, 3, 3) conv weights, per-group (G,) affine); cpg = channels/group.
    """
    w1, g1, b1, w2, g2, b2 = params
    N, C, H, W = x_nchw.shape
    HW = H * W
    out_dtype = x_nchw.dtype if out_dtype is None else out_dtype
    assert w1.shape == (C, C, 3, 3) and w2.shape == (C, C, 3, 3), \
        "stride=1 / downsample=None path requires inplanes == planes"
    assert C % cpg == 0

    # ---- samples per grid step: amortize per-step overhead, keep >=2 steps ----
    B = samples_per_step
    if B is None:
        B = N // 2 if (N % 2 == 0 and N >= 2) else 1
    assert N % B == 0, "samples_per_step must divide the batch"
    L = B * HW
    n_steps = N // B
    assert L % 128 == 0 or B == N, \
        "per-step lane extent B*H*W must be a multiple of 128 (or B == N)"

    # Single fused conv matmul needs a sublane-tile-aligned (9C, L) stack.
    packing = 4 // np.dtype(compute_dtype).itemsize
    stacked = (C % (8 * packing) == 0)

    # ---- NCHW -> (C, N*HW): channels on sublanes, all pixels on lanes ----
    x = jnp.transpose(x_nchw, (1, 0, 2, 3)).reshape(C, N * HW)

    # ---- host-side constant operands (built once, DMA'd per step) ----
    def prep_w(w):  # torch (Cout, Cin, 3, 3), tap order (kh, kw)
        w9 = jnp.transpose(w, (2, 3, 0, 1)).reshape(9, C, C)       # (9, Cout, Cin)
        if stacked:                                                 # -> (Cout, 9*Cin)
            return jnp.transpose(w9, (1, 0, 2)).reshape(C, 9 * C).astype(compute_dtype)
        return w9.astype(compute_dtype)

    def prep_gb(v):  # per-group (G,) -> per-channel column (C, 1), f32
        return jnp.repeat(v.astype(jnp.float32), cpg).reshape(C, 1)

    # Out-of-image validity mask per tap, tiled across the B samples of a step.
    hh, ww = np.meshgrid(np.arange(H), np.arange(W), indexing="ij")
    masks = np.empty((9, 1, L), np.float32)
    for t, (dh, dw) in enumerate(TAPS):
        valid = ((hh + dh >= 0) & (hh + dh < H) & (ww + dw >= 0) & (ww + dw < W))
        masks[t, 0, :] = np.tile(valid.reshape(HW).astype(np.float32), B)
    masks = jnp.asarray(masks, dtype=compute_dtype)

    # Per-sample segment matrix: seg[q, b] = 1 iff lane q belongs to sample b.
    sample_of_lane = np.repeat(np.arange(B), HW)
    seg_np = (sample_of_lane[:, None] == np.arange(B)[None, :]).astype(np.float32)
    seg = jnp.asarray(seg_np)              # (L, B)
    segT = jnp.asarray(seg_np.T)           # (B, L)

    # Group averaging: gavg[c, c'] = 1/(cpg*HW) iff c and c' share a group.
    gidx = np.arange(C) // cpg
    gavg = jnp.asarray((gidx[:, None] == gidx[None, :]).astype(np.float32)
                       / float(cpg * HW))

    kernel = _make_kernel(C, B, HW, W, stacked, compute_dtype)

    w_block = (C, 9 * C) if stacked else (9, C, C)
    w_map = (lambda n: (0, 0)) if stacked else (lambda n: (0, 0, 0))
    in_specs = [
        pl.BlockSpec((C, L), lambda n: (0, n)),           # x (also the residual)
        pl.BlockSpec(w_block, w_map),                     # conv1 weights
        pl.BlockSpec(w_block, w_map),                     # conv2 weights
        pl.BlockSpec((9, 1, L), lambda n: (0, 0, 0)),     # tap masks
        pl.BlockSpec((L, B), lambda n: (0, 0)),           # per-sample segment matrix
        pl.BlockSpec((B, L), lambda n: (0, 0)),           # its transpose (broadcast back)
        pl.BlockSpec((C, C), lambda n: (0, 0)),           # group-average matrix
        pl.BlockSpec((C, 1), lambda n: (0, 0)),           # gamma1 (per channel)
        pl.BlockSpec((C, 1), lambda n: (0, 0)),           # beta1
        pl.BlockSpec((C, 1), lambda n: (0, 0)),           # gamma2
        pl.BlockSpec((C, 1), lambda n: (0, 0)),           # beta2
    ]
    out_spec = pl.BlockSpec((C, L), lambda n: (0, n))

    out = pl.pallas_call(
        kernel,
        out_shape=jax.ShapeDtypeStruct((C, N * HW), out_dtype),
        grid_spec=pltpu.PrefetchScalarGridSpec(
            num_scalar_prefetch=0, grid=(n_steps,),
            in_specs=in_specs, out_specs=out_spec),
        compiler_params=pltpu.CompilerParams(
            dimension_semantics=("parallel",)),   # >=2 steps -> both v7x TensorCores
    )(x, prep_w(w1), prep_w(w2), masks, seg, segT, gavg,
      prep_gb(g1), prep_gb(b1), prep_gb(g2), prep_gb(b2))

    return jnp.transpose(out.reshape(C, N, H, W), (1, 0, 2, 3))


def ref_forward(x_nchw, params, cpg):
    """Pure-JAX reference matching the PyTorch BasicBlock (GroupNorm path)."""
    w1, g1, b1, w2, g2, b2 = params

    def conv(x, w):
        return lax.conv_general_dilated(x, w, (1, 1), ((1, 1), (1, 1)),
                                        dimension_numbers=("NCHW", "OIHW", "NCHW"),
                                        precision=lax.Precision.HIGHEST)

    def gn(x, gamma, beta):
        N, C, H, W = x.shape
        G = C // cpg
        xr = x.reshape(N, G, cpg, H, W)
        mean = xr.mean(axis=(2, 3, 4), keepdims=True)
        var = ((xr - mean) ** 2).mean(axis=(2, 3, 4), keepdims=True)
        xn = (xr - mean) / jnp.sqrt(var + EPS)
        xn = xn * gamma[None, :, None, None, None] + beta[None, :, None, None, None]
        return xn.reshape(N, C, H, W)

    out = jnp.maximum(gn(conv(x_nchw, w1), g1, b1), 0.0)
    out = gn(conv(out, w2), g2, b2)
    return jnp.maximum(out + x_nchw, 0.0)


if __name__ == "__main__":
    # BasicBlock(inplanes=8, planes=8, stride=1, downsample=None, group_norm=4)
    N, C, H, W = 4, 8, 16, 16
    cpg = 4                      # channels per group -> G = C // cpg groups
    G = C // cpg

    key = jax.random.PRNGKey(0)
    k = jax.random.split(key, 7)
    x = jax.random.normal(k[0], (N, C, H, W), jnp.float32)
    fan_in = C * 9
    w1 = jax.random.normal(k[1], (C, C, 3, 3), jnp.float32) / np.sqrt(fan_in)
    w2 = jax.random.normal(k[2], (C, C, 3, 3), jnp.float32) / np.sqrt(fan_in)
    g1 = 1.0 + 0.1 * jax.random.normal(k[3], (G,), jnp.float32)
    b1 = 0.1 * jax.random.normal(k[4], (G,), jnp.float32)
    g2 = 1.0 + 0.1 * jax.random.normal(k[5], (G,), jnp.float32)
    b2 = 0.1 * jax.random.normal(k[6], (G,), jnp.float32)
    params = (w1, g1, b1, w2, g2, b2)

    # 2 samples per grid step -> 2 "parallel" steps (keeps both v7x TCs busy).
    out = jax.block_until_ready(
        basic_block_forward(x, params, cpg, samples_per_step=2))
    ref = ref_forward(x, params, cpg)
    np.testing.assert_allclose(np.asarray(out), np.asarray(ref),
                               rtol=1e-4, atol=1e-4)
    print("KERNEL_OK")
</pallas_src>

<mosaic_0001>
module attributes {stable_mosaic.version = 11 : i64} {
  func.func @kernel(%arg0: i32, %arg1: memref<8x512xf32, #tpu.memory_space<vmem>>, %arg2: memref<8x72xf32, #tpu.memory_space<vmem>>, %arg3: memref<8x72xf32, #tpu.memory_space<vmem>>, %arg4: memref<9x1x512xf32, #tpu.memory_space<vmem>>, %arg5: memref<512x2xf32, #tpu.memory_space<vmem>>, %arg6: memref<2x512xf32, #tpu.memory_space<vmem>>, %arg7: memref<8x8xf32, #tpu.memory_space<vmem>>, %arg8: memref<8x1xf32, #tpu.memory_space<vmem>>, %arg9: memref<8x1xf32, #tpu.memory_space<vmem>>, %arg10: memref<8x1xf32, #tpu.memory_space<vmem>>, %arg11: memref<8x1xf32, #tpu.memory_space<vmem>>, %arg12: memref<8x512xf32, #tpu.memory_space<vmem>>) attributes {dimension_semantics = [#tpu.dimension_semantics<parallel>], iteration_bounds = array<i64: 2>, scalar_prefetch = 0 : i64, scratch_operands = 0 : i64, tpu.core_type = #tpu.core_type<tc>, window_params = [{transform_indices = @transform_0, window_bounds = array<i64: 8, 512>}, {pipeline_mode = #tpu.pipeline_mode<synchronous>, transform_indices = @transform_1, window_bounds = array<i64: 8, 72>}, {pipeline_mode = #tpu.pipeline_mode<synchronous>, transform_indices = @transform_2, window_bounds = array<i64: 8, 72>}, {pipeline_mode = #tpu.pipeline_mode<synchronous>, transform_indices = @transform_3, window_bounds = array<i64: 9, 1, 512>}, {pipeline_mode = #tpu.pipeline_mode<synchronous>, transform_indices = @transform_4, window_bounds = array<i64: 512, 2>}, {pipeline_mode = #tpu.pipeline_mode<synchronous>, transform_indices = @transform_5, window_bounds = array<i64: 2, 512>}, {pipeline_mode = #tpu.pipeline_mode<synchronous>, transform_indices = @transform_6, window_bounds = array<i64: 8, 8>}, {pipeline_mode = #tpu.pipeline_mode<synchronous>, transform_indices = @transform_7, window_bounds = array<i64: 8, 1>}, {pipeline_mode = #tpu.pipeline_mode<synchronous>, transform_indices = @transform_8, window_bounds = array<i64: 8, 1>}, {pipeline_mode = #tpu.pipeline_mode<synchronous>, transform_indices = @transform_9, window_bounds = array<i64: 8, 1>}, {pipeline_mode = #tpu.pipeline_mode<synchronous>, transform_indices = @transform_10, window_bounds = array<i64: 8, 1>}, {transform_indices = @transform_11, window_bounds = array<i64: 8, 512>}]} {
    %c0 = arith.constant 0 : index
    %c0_0 = arith.constant 0 : index
    %0 = vector.load %arg1[%c0, %c0_0] : memref<8x512xf32, #tpu.memory_space<vmem>>, vector<8x512xf32>
    %c17_i32 = arith.constant 17 : i32
    %1 = tpu.dynamic_rotate %0 by %c17_i32 dim 1 : vector<8x512xf32>, i32 -> vector<8x512xf32>
    %c0_1 = arith.constant 0 : index
    %c0_2 = arith.constant 0 : index
    %c0_3 = arith.constant 0 : index
    %2 = vector.load %arg4[%c0_1, %c0_2, %c0_3] : memref<9x1x512xf32, #tpu.memory_space<vmem>>, vector<1x1x512xf32>
    %3 = vector.shape_cast %2 : vector<1x1x512xf32> to vector<1x512xf32>
    %4 = vector.broadcast %3 : vector<1x512xf32> to vector<8x512xf32>
    %5 = arith.mulf %1, %4 : vector<8x512xf32>
    %c16_i32 = arith.constant 16 : i32
    %6 = tpu.dynamic_rotate %0 by %c16_i32 dim 1 : vector<8x512xf32>, i32 -> vector<8x512xf32>
    %c1 = arith.constant 1 : index
    %c0_4 = arith.constant 0 : index
    %c0_5 = arith.constant 0 : index
    %7 = vector.load %arg4[%c1, %c0_4, %c0_5] : memref<9x1x512xf32, #tpu.memory_space<vmem>>, vector<1x1x512xf32>
    %8 = vector.shape_cast %7 : vector<1x1x512xf32> to vector<1x512xf32>
    %9 = vector.broadcast %8 : vector<1x512xf32> to vector<8x512xf32>
    %10 = arith.mulf %6, %9 : vector<8x512xf32>
    %c15_i32 = arith.constant 15 : i32
    %11 = tpu.dynamic_rotate %0 by %c15_i32 dim 1 : vector<8x512xf32>, i32 -> vector<8x512xf32>
    %c2 = arith.constant 2 : index
    %c0_6 = arith.constant 0 : index
    %c0_7 = arith.constant 0 : index
    %12 = vector.load %arg4[%c2, %c0_6, %c0_7] : memref<9x1x512xf32, #tpu.memory_space<vmem>>, vector<1x1x512xf32>
    %13 = vector.shape_cast %12 : vector<1x1x512xf32> to vector<1x512xf32>
    %14 = vector.broadcast %13 : vector<1x512xf32> to vector<8x512xf32>
    %15 = arith.mulf %11, %14 : vector<8x512xf32>
    %c1_i32 = arith.constant 1 : i32
    %16 = tpu.dynamic_rotate %0 by %c1_i32 dim 1 : vector<8x512xf32>, i32 -> vector<8x512xf32>
    %c3 = arith.constant 3 : index
    %c0_8 = arith.constant 0 : index
    %c0_9 = arith.constant 0 : index
    %17 = vector.load %arg4[%c3, %c0_8, %c0_9] : memref<9x1x512xf32, #tpu.memory_space<vmem>>, vector<1x1x512xf32>
    %18 = vector.shape_cast %17 : vector<1x1x512xf32> to vector<1x512xf32>
    %19 = vector.broadcast %18 : vector<1x512xf32> to vector<8x512xf32>
    %20 = arith.mulf %16, %19 : vector<8x512xf32>
    %c511_i32 = arith.constant 511 : i32
    %21 = tpu.dynamic_rotate %0 by %c511_i32 dim 1 : vector<8x512xf32>, i32 -> vector<8x512xf32>
    %c5 = arith.constant 5 : index
    %c0_10 = arith.constant 0 : index
    %c0_11 = arith.constant 0 : index
    %22 = vector.load %arg4[%c5, %c0_10, %c0_11] : memref<9x1x512xf32, #tpu.memory_space<vmem>>, vector<1x1x512xf32>
    %23 = vector.shape_cast %22 : vector<1x1x512xf32> to vector<1x512xf32>
    %24 = vector.broadcast %23 : vector<1x512xf32> to vector<8x512xf32>
    %25 = arith.mulf %21, %24 : vector<8x512xf32>
    %c497_i32 = arith.constant 497 : i32
    %26 = tpu.dynamic_rotate %0 by %c497_i32 dim 1 : vector<8x512xf32>, i32 -> vector<8x512xf32>
    %c6 = arith.constant 6 : index
    %c0_12 = arith.constant 0 : index
    %c0_13 = arith.constant 0 : index
    %27 = vector.load %arg4[%c6, %c0_12, %c0_13] : memref<9x1x512xf32, #tpu.memory_space<vmem>>, vector<1x1x512xf32>
    %28 = vector.shape_cast %27 : vector<1x1x512xf32> to vector<1x512xf32>
    %29 = vector.broadcast %28 : vector<1x512xf32> to vector<8x512xf32>
    %30 = arith.mulf %26, %29 : vector<8x512xf32>
    %c496_i32 = arith.constant 496 : i32
    %31 = tpu.dynamic_rotate %0 by %c496_i32 dim 1 : vector<8x512xf32>, i32 -> vector<8x512xf32>
    %c7 = arith.constant 7 : index
    %c0_14 = arith.constant 0 : index
    %c0_15 = arith.constant 0 : index
    %32 = vector.load %arg4[%c7, %c0_14, %c0_15] : memref<9x1x512xf32, #tpu.memory_space<vmem>>, vector<1x1x512xf32>
    %33 = vector.shape_cast %32 : vector<1x1x512xf32> to vector<1x512xf32>
    %34 = vector.broadcast %33 : vector<1x512xf32> to vector<8x512xf32>
    %35 = arith.mulf %31, %34 : vector<8x512xf32>
    %c495_i32 = arith.constant 495 : i32
    %36 = tpu.dynamic_rotate %0 by %c495_i32 dim 1 : vector<8x512xf32>, i32 -> vector<8x512xf32>
    %c8 = arith.constant 8 : index
    %c0_16 = arith.constant 0 : index
    %c0_17 = arith.constant 0 : index
    %37 = vector.load %arg4[%c8, %c0_16, %c0_17] : memref<9x1x512xf32, #tpu.memory_space<vmem>>, vector<1x1x512xf32>
    %38 = vector.shape_cast %37 : vector<1x1x512xf32> to vector<1x512xf32>
    %39 = vector.broadcast %38 : vector<1x512xf32> to vector<8x512xf32>
    %40 = arith.mulf %36, %39 : vector<8x512xf32>
    %41 = tpu.concatenate %5, %10, %15, %20, %0, %25, %30, %35, %40 in 0 : vector<8x512xf32>, vector<8x512xf32>, vector<8x512xf32>, vector<8x512xf32>, vector<8x512xf32>, vector<8x512xf32>, vector<8x512xf32>, vector<8x512xf32>, vector<8x512xf32> -> vector<72x512xf32>
    %c0_18 = arith.constant 0 : index
    %c0_19 = arith.constant 0 : index
    %42 = vector.load %arg2[%c0_18, %c0_19] : memref<8x72xf32, #tpu.memory_space<vmem>>, vector<8x72xf32>
    %cst = arith.constant dense<0.000000e+00> : vector<8x512xf32>
    %43 = tpu.matmul %42, %41, %cst {dimension_numbers = #tpu.dot_dimension_numbers<[1], [0], [0], [1], [0, 0, 1, 1], [], []>} : vector<8x72xf32>, vector<72x512xf32>, vector<8x512xf32> -> vector<8x512xf32>
    %c0_20 = arith.constant 0 : index
    %c0_21 = arith.constant 0 : index
    %44 = vector.load %arg5[%c0_20, %c0_21] : memref<512x2xf32, #tpu.memory_space<vmem>>, vector<512x2xf32>
    %cst_22 = arith.constant dense<0.000000e+00> : vector<8x2xf32>
    %45 = tpu.matmul %43, %44, %cst_22 {dimension_numbers = #tpu.dot_dimension_numbers<[1], [0], [0], [1], [0, 0, 1, 1], [], []>} : vector<8x512xf32>, vector<512x2xf32>, vector<8x2xf32> -> vector<8x2xf32>
    %46 = arith.mulf %43, %43 : vector<8x512xf32>
    %c0_23 = arith.constant 0 : index
    %c0_24 = arith.constant 0 : index
    %47 = vector.load %arg5[%c0_23, %c0_24] : memref<512x2xf32, #tpu.memory_space<vmem>>, vector<512x2xf32>
    %cst_25 = arith.constant dense<0.000000e+00> : vector<8x2xf32>
    %48 = tpu.matmul %46, %47, %cst_25 {dimension_numbers = #tpu.dot_dimension_numbers<[1], [0], [0], [1], [0, 0, 1, 1], [], []>} : vector<8x512xf32>, vector<512x2xf32>, vector<8x2xf32> -> vector<8x2xf32>
    %c0_26 = arith.constant 0 : index
    %c0_27 = arith.constant 0 : index
    %49 = vector.load %arg7[%c0_26, %c0_27] : memref<8x8xf32, #tpu.memory_space<vmem>>, vector<8x8xf32>
    %cst_28 = arith.constant dense<0.000000e+00> : vector<8x2xf32>
    %50 = tpu.matmul %49, %45, %cst_28 {dimension_numbers = #tpu.dot_dimension_numbers<[1], [0], [0], [1], [0, 0, 1, 1], [], []>} : vector<8x8xf32>, vector<8x2xf32>, vector<8x2xf32> -> vector<8x2xf32>
    %c0_29 = arith.constant 0 : index
    %c0_30 = arith.constant 0 : index
    %51 = vector.load %arg7[%c0_29, %c0_30] : memref<8x8xf32, #tpu.memory_space<vmem>>, vector<8x8xf32>
    %cst_31 = arith.constant dense<0.000000e+00> : vector<8x2xf32>
    %52 = tpu.matmul %51, %48, %cst_31 {dimension_numbers = #tpu.dot_dimension_numbers<[1], [0], [0], [1], [0, 0, 1, 1], [], []>} : vector<8x8xf32>, vector<8x2xf32>, vector<8x2xf32> -> vector<8x2xf32>
    %53 = arith.mulf %50, %50 : vector<8x2xf32>
    %54 = arith.subf %52, %53 : vector<8x2xf32>
    %cst_32 = arith.constant 0.000000e+00 : f32
    %55 = vector.broadcast %cst_32 : f32 to vector<8x2xf32>
    %56 = arith.maximumf %54, %55 : vector<8x2xf32>
    %cst_33 = arith.constant 9.99999974E-6 : f32
    %57 = vector.broadcast %cst_33 : f32 to vector<8x2xf32>
    %58 = arith.addf %56, %57 : vector<8x2xf32>
    %59 = math.rsqrt %58 : vector<8x2xf32>
    %c0_34 = arith.constant 0 : index
    %c0_35 = arith.constant 0 : index
    %60 = vector.load %arg8[%c0_34, %c0_35] : memref<8x1xf32, #tpu.memory_space<vmem>>, vector<8x1xf32>
    %61 = vector.broadcast %60 : vector<8x1xf32> to vector<8x2xf32>
    %62 = arith.mulf %59, %61 : vector<8x2xf32>
    %c0_36 = arith.constant 0 : index
    %c0_37 = arith.constant 0 : index
    %63 = vector.load %arg9[%c0_36, %c0_37] : memref<8x1xf32, #tpu.memory_space<vmem>>, vector<8x1xf32>
    %64 = arith.mulf %50, %62 : vector<8x2xf32>
    %65 = vector.broadcast %63 : vector<8x1xf32> to vector<8x2xf32>
    %66 = arith.subf %65, %64 : vector<8x2xf32>
    %c0_38 = arith.constant 0 : index
    %c0_39 = arith.constant 0 : index
    %67 = vector.load %arg6[%c0_38, %c0_39] : memref<2x512xf32, #tpu.memory_space<vmem>>, vector<2x512xf32>
    %cst_40 = arith.constant dense<0.000000e+00> : vector<8x512xf32>
    %68 = tpu.matmul %62, %67, %cst_40 {dimension_numbers = #tpu.dot_dimension_numbers<[1], [0], [0], [1], [0, 0, 1, 1], [], []>} : vector<8x2xf32>, vector<2x512xf32>, vector<8x512xf32> -> vector<8x512xf32>
    %69 = arith.mulf %43, %68 : vector<8x512xf32>
    %c0_41 = arith.constant 0 : index
    %c0_42 = arith.constant 0 : index
    %70 = vector.load %arg6[%c0_41, %c0_42] : memref<2x512xf32, #tpu.memory_space<vmem>>, vector<2x512xf32>
    %cst_43 = arith.constant dense<0.000000e+00> : vector<8x512xf32>
    %71 = tpu.matmul %66, %70, %cst_43 {dimension_numbers = #tpu.dot_dimension_numbers<[1], [0], [0], [1], [0, 0, 1, 1], [], []>} : vector<8x2xf32>, vector<2x512xf32>, vector<8x512xf32> -> vector<8x512xf32>
    %72 = arith.addf %69, %71 : vector<8x512xf32>
    %cst_44 = arith.constant 0.000000e+00 : f32
    %73 = vector.broadcast %cst_44 : f32 to vector<8x512xf32>
    %74 = arith.maximumf %72, %73 : vector<8x512xf32>
    %c17_i32_45 = arith.constant 17 : i32
    %75 = tpu.dynamic_rotate %74 by %c17_i32_45 dim 1 : vector<8x512xf32>, i32 -> vector<8x512xf32>
    %c0_46 = arith.constant 0 : index
    %c0_47 = arith.constant 0 : index
    %c0_48 = arith.constant 0 : index
    %76 = vector.load %arg4[%c0_46, %c0_47, %c0_48] : memref<9x1x512xf32, #tpu.memory_space<vmem>>, vector<1x1x512xf32>
    %77 = vector.shape_cast %76 : vector<1x1x512xf32> to vector<1x512xf32>
    %78 = vector.broadcast %77 : vector<1x512xf32> to vector<8x512xf32>
    %79 = arith.mulf %75, %78 : vector<8x512xf32>
    %c16_i32_49 = arith.constant 16 : i32
    %80 = tpu.dynamic_rotate %74 by %c16_i32_49 dim 1 : vector<8x512xf32>, i32 -> vector<8x512xf32>
    %c1_50 = arith.constant 1 : index
    %c0_51 = arith.constant 0 : index
    %c0_52 = arith.constant 0 : index
    %81 = vector.load %arg4[%c1_50, %c0_51, %c0_52] : memref<9x1x512xf32, #tpu.memory_space<vmem>>, vector<1x1x512xf32>
    %82 = vector.shape_cast %81 : vector<1x1x512xf32> to vector<1x512xf32>
    %83 = vector.broadcast %82 : vector<1x512xf32> to vector<8x512xf32>
    %84 = arith.mulf %80, %83 : vector<8x512xf32>
    %c15_i32_53 = arith.constant 15 : i32
    %85 = tpu.dynamic_rotate %74 by %c15_i32_53 dim 1 : vector<8x512xf32>, i32 -> vector<8x512xf32>
    %c2_54 = arith.constant 2 : index
    %c0_55 = arith.constant 0 : index
    %c0_56 = arith.constant 0 : index
    %86 = vector.load %arg4[%c2_54, %c0_55, %c0_56] : memref<9x1x512xf32, #tpu.memory_space<vmem>>, vector<1x1x512xf32>
    %87 = vector.shape_cast %86 : vector<1x1x512xf32> to vector<1x512xf32>
    %88 = vector.broadcast %87 : vector<1x512xf32> to vector<8x512xf32>
    %89 = arith.mulf %85, %88 : vector<8x512xf32>
    %c1_i32_57 = arith.constant 1 : i32
    %90 = tpu.dynamic_rotate %74 by %c1_i32_57 dim 1 : vector<8x512xf32>, i32 -> vector<8x512xf32>
    %c3_58 = arith.constant 3 : index
    %c0_59 = arith.constant 0 : index
    %c0_60 = arith.constant 0 : index
    %91 = vector.load %arg4[%c3_58, %c0_59, %c0_60] : memref<9x1x512xf32, #tpu.memory_space<vmem>>, vector<1x1x512xf32>
    %92 = vector.shape_cast %91 : vector<1x1x512xf32> to vector<1x512xf32>
    %93 = vector.broadcast %92 : vector<1x512xf32> to vector<8x512xf32>
    %94 = arith.mulf %90, %93 : vector<8x512xf32>
    %c511_i32_61 = arith.constant 511 : i32
    %95 = tpu.dynamic_rotate %74 by %c511_i32_61 dim 1 : vector<8x512xf32>, i32 -> vector<8x512xf32>
    %c5_62 = arith.constant 5 : index
    %c0_63 = arith.constant 0 : index
    %c0_64 = arith.constant 0 : index
    %96 = vector.load %arg4[%c5_62, %c0_63, %c0_64] : memref<9x1x512xf32, #tpu.memory_space<vmem>>, vector<1x1x512xf32>
    %97 = vector.shape_cast %96 : vector<1x1x512xf32> to vector<1x512xf32>
    %98 = vector.broadcast %97 : vector<1x512xf32> to vector<8x512xf32>
    %99 = arith.mulf %95, %98 : vector<8x512xf32>
    %c497_i32_65 = arith.constant 497 : i32
    %100 = tpu.dynamic_rotate %74 by %c497_i32_65 dim 1 : vector<8x512xf32>, i32 -> vector<8x512xf32>
    %c6_66 = arith.constant 6 : index
    %c0_67 = arith.constant 0 : index
    %c0_68 = arith.constant 0 : index
    %101 = vector.load %arg4[%c6_66, %c0_67, %c0_68] : memref<9x1x512xf32, #tpu.memory_space<vmem>>, vector<1x1x512xf32>
    %102 = vector.shape_cast %101 : vector<1x1x512xf32> to vector<1x512xf32>
    %103 = vector.broadcast %102 : vector<1x512xf32> to vector<8x512xf32>
    %104 = arith.mulf %100, %103 : vector<8x512xf32>
    %c496_i32_69 = arith.constant 496 : i32
    %105 = tpu.dynamic_rotate %74 by %c496_i32_69 dim 1 : vector<8x512xf32>, i32 -> vector<8x512xf32>
    %c7_70 = arith.constant 7 : index
    %c0_71 = arith.constant 0 : index
    %c0_72 = arith.constant 0 : index
    %106 = vector.load %arg4[%c7_70, %c0_71, %c0_72] : memref<9x1x512xf32, #tpu.memory_space<vmem>>, vector<1x1x512xf32>
    %107 = vector.shape_cast %106 : vector<1x1x512xf32> to vector<1x512xf32>
    %108 = vector.broadcast %107 : vector<1x512xf32> to vector<8x512xf32>
    %109 = arith.mulf %105, %108 : vector<8x512xf32>
    %c495_i32_73 = arith.constant 495 : i32
    %110 = tpu.dynamic_rotate %74 by %c495_i32_73 dim 1 : vector<8x512xf32>, i32 -> vector<8x512xf32>
    %c8_74 = arith.constant 8 : index
    %c0_75 = arith.constant 0 : index
    %c0_76 = arith.constant 0 : index
    %111 = vector.load %arg4[%c8_74, %c0_75, %c0_76] : memref<9x1x512xf32, #tpu.memory_space<vmem>>, vector<1x1x512xf32>
    %112 = vector.shape_cast %111 : vector<1x1x512xf32> to vector<1x512xf32>
    %113 = vector.broadcast %112 : vector<1x512xf32> to vector<8x512xf32>
    %114 = arith.mulf %110, %113 : vector<8x512xf32>
    %115 = tpu.concatenate %79, %84, %89, %94, %74, %99, %104, %109, %114 in 0 : vector<8x512xf32>, vector<8x512xf32>, vector<8x512xf32>, vector<8x512xf32>, vector<8x512xf32>, vector<8x512xf32>, vector<8x512xf32>, vector<8x512xf32>, vector<8x512xf32> -> vector<72x512xf32>
    %c0_77 = arith.constant 0 : index
    %c0_78 = arith.constant 0 : index
    %116 = vector.load %arg3[%c0_77, %c0_78] : memref<8x72xf32, #tpu.memory_space<vmem>>, vector<8x72xf32>
    %cst_79 = arith.constant dense<0.000000e+00> : vector<8x512xf32>
    %117 = tpu.matmul %116, %115, %cst_79 {dimension_numbers = #tpu.dot_dimension_numbers<[1], [0], [0], [1], [0, 0, 1, 1], [], []>} : vector<8x72xf32>, vector<72x512xf32>, vector<8x512xf32> -> vector<8x512xf32>
    %c0_80 = arith.constant 0 : index
    %c0_81 = arith.constant 0 : index
    %118 = vector.load %arg5[%c0_80, %c0_81] : memref<512x2xf32, #tpu.memory_space<vmem>>, vector<512x2xf32>
    %cst_82 = arith.constant dense<0.000000e+00> : vector<8x2xf32>
    %119 = tpu.matmul %117, %118, %cst_82 {dimension_numbers = #tpu.dot_dimension_numbers<[1], [0], [0], [1], [0, 0, 1, 1], [], []>} : vector<8x512xf32>, vector<512x2xf32>, vector<8x2xf32> -> vector<8x2xf32>
    %120 = arith.mulf %117, %117 : vector<8x512xf32>
    %c0_83 = arith.constant 0 : index
    %c0_84 = arith.constant 0 : index
    %121 = vector.load %arg5[%c0_83, %c0_84] : memref<512x2xf32, #tpu.memory_space<vmem>>, vector<512x2xf32>
    %cst_85 = arith.constant dense<0.000000e+00> : vector<8x2xf32>
    %122 = tpu.matmul %120, %121, %cst_85 {dimension_numbers = #tpu.dot_dimension_numbers<[1], [0], [0], [1], [0, 0, 1, 1], [], []>} : vector<8x512xf32>, vector<512x2xf32>, vector<8x2xf32> -> vector<8x2xf32>
    %c0_86 = arith.constant 0 : index
    %c0_87 = arith.constant 0 : index
    %123 = vector.load %arg7[%c0_86, %c0_87] : memref<8x8xf32, #tpu.memory_space<vmem>>, vector<8x8xf32>
    %cst_88 = arith.constant dense<0.000000e+00> : vector<8x2xf32>
    %124 = tpu.matmul %123, %119, %cst_88 {dimension_numbers = #tpu.dot_dimension_numbers<[1], [0], [0], [1], [0, 0, 1, 1], [], []>} : vector<8x8xf32>, vector<8x2xf32>, vector<8x2xf32> -> vector<8x2xf32>
    %c0_89 = arith.constant 0 : index
    %c0_90 = arith.constant 0 : index
    %125 = vector.load %arg7[%c0_89, %c0_90] : memref<8x8xf32, #tpu.memory_space<vmem>>, vector<8x8xf32>
    %cst_91 = arith.constant dense<0.000000e+00> : vector<8x2xf32>
    %126 = tpu.matmul %125, %122, %cst_91 {dimension_numbers = #tpu.dot_dimension_numbers<[1], [0], [0], [1], [0, 0, 1, 1], [], []>} : vector<8x8xf32>, vector<8x2xf32>, vector<8x2xf32> -> vector<8x2xf32>
    %127 = arith.mulf %124, %124 : vector<8x2xf32>
    %128 = arith.subf %126, %127 : vector<8x2xf32>
    %cst_92 = arith.constant 0.000000e+00 : f32
    %129 = vector.broadcast %cst_92 : f32 to vector<8x2xf32>
    %130 = arith.maximumf %128, %129 : vector<8x2xf32>
    %cst_93 = arith.constant 9.99999974E-6 : f32
    %131 = vector.broadcast %cst_93 : f32 to vector<8x2xf32>
    %132 = arith.addf %130, %131 : vector<8x2xf32>
    %133 = math.rsqrt %132 : vector<8x2xf32>
    %c0_94 = arith.constant 0 : index
    %c0_95 = arith.constant 0 : index
    %134 = vector.load %arg10[%c0_94, %c0_95] : memref<8x1xf32, #tpu.memory_space<vmem>>, vector<8x1xf32>
    %135 = vector.broadcast %134 : vector<8x1xf32> to vector<8x2xf32>
    %136 = arith.mulf %133, %135 : vector<8x2xf32>
    %c0_96 = arith.constant 0 : index
    %c0_97 = arith.constant 0 : index
    %137 = vector.load %arg11[%c0_96, %c0_97] : memref<8x1xf32, #tpu.memory_space<vmem>>, vector<8x1xf32>
    %138 = arith.mulf %124, %136 : vector<8x2xf32>
    %139 = vector.broadcast %137 : vector<8x1xf32> to vector<8x2xf32>
    %140 = arith.subf %139, %138 : vector<8x2xf32>
    %c0_98 = arith.constant 0 : index
    %c0_99 = arith.constant 0 : index
    %141 = vector.load %arg6[%c0_98, %c0_99] : memref<2x512xf32, #tpu.memory_space<vmem>>, vector<2x512xf32>
    %cst_100 = arith.constant dense<0.000000e+00> : vector<8x512xf32>
    %142 = tpu.matmul %136, %141, %cst_100 {dimension_numbers = #tpu.dot_dimension_numbers<[1], [0], [0], [1], [0, 0, 1, 1], [], []>} : vector<8x2xf32>, vector<2x512xf32>, vector<8x512xf32> -> vector<8x512xf32>
    %143 = arith.mulf %117, %142 : vector<8x512xf32>
    %c0_101 = arith.constant 0 : index
    %c0_102 = arith.constant 0 : index
    %144 = vector.load %arg6[%c0_101, %c0_102] : memref<2x512xf32, #tpu.memory_space<vmem>>, vector<2x512xf32>
    %cst_103 = arith.constant dense<0.000000e+00> : vector<8x512xf32>
    %145 = tpu.matmul %140, %144, %cst_103 {dimension_numbers = #tpu.dot_dimension_numbers<[1], [0], [0], [1], [0, 0, 1, 1], [], []>} : vector<8x2xf32>, vector<2x512xf32>, vector<8x512xf32> -> vector<8x512xf32>
    %146 = arith.addf %143, %145 : vector<8x512xf32>
    %147 = arith.addf %146, %0 : vector<8x512xf32>
    %cst_104 = arith.constant 0.000000e+00 : f32
    %148 = vector.broadcast %cst_104 : f32 to vector<8x512xf32>
    %149 = arith.maximumf %147, %148 : vector<8x512xf32>
    %c0_105 = arith.constant 0 : index
    %c0_106 = arith.constant 0 : index
    %150 = vector.load %arg12[%c0_105, %c0_106] : memref<8x512xf32, #tpu.memory_space<vmem>>, vector<8x512xf32>
    tpu.vector_store %arg12[%c0_105, %c0_106], %149 {strides = array<i32>} : memref<8x512xf32, #tpu.memory_space<vmem>>, vector<8x512xf32>,
    return
  }
  func.func @transform_0(%arg0: i32) -> (i32, i32) {
    %c0_i32 = arith.constant 0 : i32
    %c0_i32_0 = arith.constant 0 : i32
    return %c0_i32, %arg0 : i32, i32
  }
  func.func @transform_1(%arg0: i32) -> (i32, i32) {
    %c0_i32 = arith.constant 0 : i32
    %c0_i32_0 = arith.constant 0 : i32
    %c0_i32_1 = arith.constant 0 : i32
    return %c0_i32, %c0_i32_0 : i32, i32
  }
  func.func @transform_2(%arg0: i32) -> (i32, i32) {
    %c0_i32 = arith.constant 0 : i32
    %c0_i32_0 = arith.constant 0 : i32
    %c0_i32_1 = arith.constant 0 : i32
    return %c0_i32, %c0_i32_0 : i32, i32
  }
  func.func @transform_3(%arg0: i32) -> (i32, i32, i32) {
    %c0_i32 = arith.constant 0 : i32
    %c0_i32_0 = arith.constant 0 : i32
    %c0_i32_1 = arith.constant 0 : i32
    %c0_i32_2 = arith.constant 0 : i32
    return %c0_i32, %c0_i32_0, %c0_i32_1 : i32, i32, i32
  }
  func.func @transform_4(%arg0: i32) -> (i32, i32) {
    %c0_i32 = arith.constant 0 : i32
    %c0_i32_0 = arith.constant 0 : i32
    %c0_i32_1 = arith.constant 0 : i32
    return %c0_i32, %c0_i32_0 : i32, i32
  }
  func.func @transform_5(%arg0: i32) -> (i32, i32) {
    %c0_i32 = arith.constant 0 : i32
    %c0_i32_0 = arith.constant 0 : i32
    %c0_i32_1 = arith.constant 0 : i32
    return %c0_i32, %c0_i32_0 : i32, i32
  }
  func.func @transform_6(%arg0: i32) -> (i32, i32) {
    %c0_i32 = arith.constant 0 : i32
    %c0_i32_0 = arith.constant 0 : i32
    %c0_i32_1 = arith.constant 0 : i32
    return %c0_i32, %c0_i32_0 : i32, i32
  }
  func.func @transform_7(%arg0: i32) -> (i32, i32) {
    %c0_i32 = arith.constant 0 : i32
    %c0_i32_0 = arith.constant 0 : i32
    %c0_i32_1 = arith.constant 0 : i32
    return %c0_i32, %c0_i32_0 : i32, i32
  }
  func.func @transform_8(%arg0: i32) -> (i32, i32) {
    %c0_i32 = arith.constant 0 : i32
    %c0_i32_0 = arith.constant 0 : i32
    %c0_i32_1 = arith.constant 0 : i32
    return %c0_i32, %c0_i32_0 : i32, i32
  }
  func.func @transform_9(%arg0: i32) -> (i32, i32) {
    %c0_i32 = arith.constant 0 : i32
    %c0_i32_0 = arith.constant 0 : i32
    %c0_i32_1 = arith.constant 0 : i32
    return %c0_i32, %c0_i32_0 : i32, i32
  }
  func.func @transform_10(%arg0: i32) -> (i32, i32) {
    %c0_i32 = arith.constant 0 : i32
    %c0_i32_0 = arith.constant 0 : i32
    %c0_i32_1 = arith.constant 0 : i32
    return %c0_i32, %c0_i32_0 : i32, i32
  }
  func.func @transform_11(%arg0: i32) -> (i32, i32) {
    %c0_i32 = arith.constant 0 : i32
    %c0_i32_0 = arith.constant 0 : i32
    return %c0_i32, %arg0 : i32, i32
  }
}

</mosaic_0001>

<bundles_post_ra>
// kernel: tpu_custom_call.1
= control target key start
LH: loop header
LB: loop body
LE: loop exit
PB: predicated region body
PF: predicated region fallthrough
CT: control target
= control target key end

     0   :  { %s4831_s0 = inlined_call_operand.vmem [shape: f32[8,1024], index: 0, kind: input, shape index: {}]   ;;  %s4832_s1 = inlined_call_operand.vmem [shape: f32[8,72], index: 1, kind: input, shape index: {}]   ;;  %s4833_s2 = inlined_call_operand.vmem [shape: f32[8,72], index: 2, kind: input, shape index: {}]   ;;  %s4834_s3 = inlined_call_operand.vmem [shape: f32[9,1,512], index: 3, kind: input, shape index: {}]   ;;  %s4835_s4 = inlined_call_operand.vmem [shape: f32[512,2], index: 4, kind: input, shape index: {}]   ;;  %s4836_s5 = inlined_call_operand.vmem [shape: f32[2,512], index: 5, kind: input, shape index: {}]   ;;  %s4837_s6 = inlined_call_operand.vmem [shape: f32[8,8], index: 6, kind: input, shape index: {}]   ;;  %s4838_s7 = inlined_call_operand.vmem [shape: f32[8,1], index: 7, kind: input, shape index: {}]   ;;  %s4839_s8 = inlined_call_operand.vmem [shape: f32[8,1], index: 8, kind: input, shape index: {}]   ;;  %s4840_s9 = inlined_call_operand.vmem [shape: f32[8,1], index: 9, kind: input, shape index: {}]   ;;  %s4841_s10 = inlined_call_operand.vmem [shape: f32[8,1], index: 10, kind: input, shape index: {}]   ;;  %s4842_s11 = inlined_call_operand.hbm [shape: f32[8,1024], index: 11, kind: output, shape index: {}]  }
   0x1   :  { %4946 = sst [smem:[#allocation65_spill]] %s4831_s0 }
   0x2   :  { %16 = vsyncpa [#allocation3], 0 }
   0x3   :  { %18 = vsyncpa [#allocation3 + $0x1], 0  ;;  %s3408_s17 = smov 0   ;;  %s3410_s18 = smov 0  }
   0x4   :  { %s3412_s19 = smov 0   ;;  %s3414_s20 = smov 0  }
   0x5 LB: > { %s3429_s21 = sadd.s32 4294967295, %s3333_s20   ;;  %s2806_s22 = sadd.s32 4294967294, %s3333_s20   ;;  %s3333_s20 = sphi %s3414_s20, %s5090_s20   ;;  %s3329_s19 = sphi %s3412_s19, %s5089_s19   ;;  %s3325_s18 = sphi %s3410_s18, %s5088_s18   ;;  %s3321_s17 = sphi %s3408_s17, %s5087_s17  }
   0x6   : > { %s3433_s23 = sadd.s32 1, %s3333_s20   ;;  %s267_s24 = sadd.s32 1, %s3329_s19 }
   0x7   : > { %s264_s25 = ssub.s32 %s3333_s20, %s3433_s23  ;;  %p277_p0 = scmp.ne.s32.totalorder %s3329_s19, %s3325_s18 }
   0x8   : > { %p265_p1 = scmp.eq.s32.totalorder %s264_s25, 0  ;;  %p278_p2 = scmp.eq.s32.totalorder %s3429_s21, 1 }
   0x9   : > { %p283_p3 = scmp.ne.s32.totalorder %s3325_s18, %s3321_s17  ;;  %p284_p4 = scmp.eq.s32.totalorder %s2806_s22, 1 }
   0xa   : > { %s3444_s26 = scalar_select %p265_p1, %s3329_s19, %s267_s24  }
   0xb   : > { %p3446_p5 = por %p278_p2, %p277_p0  ;;  %p3450_p6 = por %p284_p4, %p283_p3 }
   0xc   : > { %p2809_p7 = scmp.ge.s32.totalorder %s3333_s20, 1  ;;  %p341_p8 = scmp.lt.s32.totalorder %s3333_s20, 3 }
   0xe   : > { %p342_p9 = pnand %p2809_p7, %p341_p8 }
  0x10   : > { %345 = sbr.rel (%p342_p9) target bundleno = 2098 (0x832), region = 64 }
  0x15   : > { %s2811_s29 = sshll.u32 %s3429_s21, 2  ;;  %s4949_s0 = sld [smem:[#allocation65_spill]]  ;;  %v4857_v4 = vmov 0.0   ;;  %v400_v5 = vlaneseq  ;;  %v2819_v12 = vld [vmem:[%s4834_s3 + $0x20] sm:$0xf]  ;;  %vm714_vm8 = vcmask 588800  }
  0x16   : > { %p382_p10 = scmp.lt.s32.totalorder %s2811_s29, 7  ;;  %s3335_s15 = smov 111   ;;  %782 = vmatprep.mubr.f32.mxu0 %v4857_v4  ;;  %853 = vmatprep.mubr.f32.mxu1 %v4857_v4  ;;  %v2818_v30 = vld [vmem:[%s4834_s3 + $0x1c] sm:$0xf]  ;;  %v2817_v47 = vld [vmem:[%s4834_s3 + $0x18] sm:$0xf] }
  0x17   : > { %s4855_s16 = smov 112   ;;  %s4853_s22 = smov 113   ;;  %v3540_v6 = vshrl.u32 %v400_v5, 7  ;;  %v3542_v7 = vand.u32 127, %v400_v5  ;;  %v2816_v5 = vld [vmem:[%s4834_s3 + $0x14] sm:$0xf] }
  0x18   : > { %s5092_s29 = smov (!%p382_p10, %s2811_s29), 7  ;;  %s4851_s24 = smov 127   ;;  %v3962_v4 = vld [vmem:[%s4835_s4 + $0x40] sm:$0xff]  ;;  %vm3344_vm9 = vmmov 0   ;;  %vm1209_vm10 = vcmask 64512   ;;  %vm1396_vm11 = vcmask 1041408  }
  0x19   : > { %s2812_s30 = sshll.u32 %s5092_s29, 3  ;;  %s4849_s25 = smov 1   ;;  %4950 = vst [vmem:[#allocation5_spill] sm:$0xff] %v3540_v6  ;;  %4951 = vst [vmem:[#allocation6_spill] sm:$0xff] %v3542_v7  ;;  %v3545_v8 = vsub.s32 1, %v3540_v6  ;;  %v3548_v9 = vsub.s32 3, %v3540_v6 }
  0x1a   : > { %s4847_s29 = smov 15   ;;  %s4845_s12 = smov 17   ;;  %v3551_v10 = vsub.s32 0, %v3540_v6  ;;  %v3554_v11 = vsub.s32 2, %v3540_v6  ;;  %vm681_vm0 = vcmp.lt.s32.totalorder %v3542_v7, 111  ;;  %vm641_vm1 = vcmp.lt.s32.totalorder %v3542_v7, 112 }
  0x1b   : > { %s3460_s14 = scalar_lea.vmem %s4949_s0, %s2812_s30  ;;  %s4843_s30 = smov 16   ;;  %v3561_v15 = vrot.slane %v2819_v12, %v3545_v8  ;;  %v3564_v16 = vrot.slane %v2819_v12, %v3548_v9  ;;  %v3589_v32 = vrot.slane %v2818_v30, %v3548_v9  ;;  %v3592_v33 = vrot.slane %v2818_v30, %v3545_v8  ;;  %v4170_v6 = vld [vmem:[%s4835_s4 + $0x100] sm:$0xff] }
  0x1c   : > { %v3463_v0 = vld [vmem:[%s3460_s14 + $0x10] sm:$0xff]  ;;  %v3466_v1 = vld [vmem:[%s3460_s14] sm:$0xff]  ;;  %v3473_v2 = vld [vmem:[%s3460_s14 + $0x18] sm:$0xff]  ;;  %v3567_v17 = vrot.slane %v2819_v12, %v3551_v10  ;;  %v3570_v18 = vrot.slane %v2819_v12, %v3554_v11  ;;  %v3595_v34 = vrot.slane %v2818_v30, %v3554_v11  ;;  %v3598_v35 = vrot.slane %v2818_v30, %v3551_v10  ;;  %5005 = vst [vmem:[#allocation60_spill] sm:$0xff] %v4170_v6  ;;  %s2857_s0 = sshll.u32 %s3429_s21, 9 }
  0x1d   : > { %677 = vrot.lane.b32.xlu1 %v3463_v0, %s3335_s15  ;;  %673 = vrot.lane.b32.xlu0 %v3466_v1, %s3335_s15  ;;  %v3476_v3 = vld [vmem:[%s3460_s14 + $0x8] sm:$0xff]  ;;  %4952 = vst [vmem:[#allocation7_spill] sm:$0xff] %v3561_v15  ;;  %4953 = vst [vmem:[#allocation8_spill] sm:$0xff] %v3564_v16  ;;  %vm601_vm2 = vcmp.lt.s32.totalorder %v3542_v7, 113  ;;  %v3617_v49 = vrot.slane %v2817_v47, %v3548_v9  ;;  %v3620_v50 = vrot.slane %v2817_v47, %v3545_v8  ;;  %vm1392_vm12 = vcmask 15360  }
  0x1e   : > { %4954 = vst [vmem:[#allocation9_spill] sm:$0xff] %v3567_v17  ;;  %4955 = vst [vmem:[#allocation10_spill] sm:$0xff] %v3570_v18  ;;  %v3623_v51 = vrot.slane %v2817_v47, %v3554_v11  ;;  %v3626_v52 = vrot.slane %v2817_v47, %v3551_v10  ;;  %vm561_vm3 = vcmp.lt.s32.totalorder %v3542_v7, 127  ;;  %vm521_vm4 = vcmp.lt.s32.totalorder %v3542_v7, 1 }
  0x1f   : > { %4956 = vst [vmem:[#allocation11_spill] sm:$0xff] %v3589_v32  ;;  %4957 = vst [vmem:[#allocation12_spill] sm:$0xff] %v3592_v33  ;;  %vm481_vm5 = vcmp.lt.s32.totalorder %v3542_v7, 15  ;;  %vm441_vm6 = vcmp.lt.s32.totalorder %v3542_v7, 16  ;;  %vm402_vm7 = vcmp.lt.s32.totalorder %v3542_v7, 17  ;;  %v4163_v7 = vld [vmem:[%s4835_s4 + $0x180] sm:$0xff] }
  0x20   : > { %4958 = vst [vmem:[#allocation13_spill] sm:$0xff] %v3595_v34  ;;  %4959 = vst [vmem:[#allocation14_spill] sm:$0xff] %v3598_v35 }
  0x21   : > { %679 = vrot.lane.b32.xlu1 %v3473_v2, %s3335_s15  ;;  %675 = vrot.lane.b32.xlu0 %v3476_v3, %s3335_s15  ;;  %4960 = vst [vmem:[#allocation15_spill] sm:$0xff] %v3617_v49  ;;  %4961 = vst [vmem:[#allocation16_spill] sm:$0xff] %v3620_v50 }
  0x22   : > { %4962 = vst [vmem:[#allocation17_spill] sm:$0xff] %v3623_v51  ;;  %4963 = vst [vmem:[#allocation18_spill] sm:$0xff] %v3626_v52 }
  0x23   : > { %5004 = vst [vmem:[#allocation59_spill] sm:$0xff] %v4163_v7 }
  0x25   : > { %635 = vrot.lane.b32.xlu1 %v3476_v3, %s4855_s16  ;;  %633 = vrot.lane.b32.xlu0 %v3466_v1, %s4855_s16 }
  0x29   : > { %639 = vrot.lane.b32.xlu1 %v3473_v2, %s4855_s16  ;;  %637 = vrot.lane.b32.xlu0 %v3463_v0, %s4855_s16  ;;  %s5022_s16 = smov 1  }
  0x2d   : > { %595 = vrot.lane.b32.xlu1 %v3476_v3, %s4853_s22  ;;  %593 = vrot.lane.b32.xlu0 %v3466_v1, %s4853_s22 }
  0x31   : > { %599 = vrot.lane.b32.xlu1 %v3473_v2, %s4853_s22  ;;  %597 = vrot.lane.b32.xlu0 %v3463_v0, %s4853_s22  ;;  %s5023_s22 = smov 15  }
  0x35   : > { %555 = vrot.lane.b32.xlu1 %v3476_v3, %s4851_s24  ;;  %553 = vrot.lane.b32.xlu0 %v3466_v1, %s4851_s24 }
  0x39   : > { %559 = vrot.lane.b32.xlu1 %v3473_v2, %s4851_s24  ;;  %557 = vrot.lane.b32.xlu0 %v3463_v0, %s4851_s24  ;;  %s5024_s24 = smov 16  }
  0x3d   : > { %515 = vrot.lane.b32.xlu1 %v3476_v3, %s4849_s25  ;;  %513 = vrot.lane.b32.xlu0 %v3466_v1, %s4849_s25 }
  0x41   : > { %519 = vrot.lane.b32.xlu1 %v3473_v2, %s4849_s25  ;;  %517 = vrot.lane.b32.xlu0 %v3463_v0, %s4849_s25  ;;  %s5025_s25 = smov 17  }
  0x45   : > { %475 = vrot.lane.b32.xlu1 %v3476_v3, %s4847_s29  ;;  %473 = vrot.lane.b32.xlu0 %v3466_v1, %s4847_s29 }
  0x49   : > { %479 = vrot.lane.b32.xlu1 %v3473_v2, %s4847_s29  ;;  %477 = vrot.lane.b32.xlu0 %v3463_v0, %s4847_s29  ;;  %s5019_s29 = smov 112  }
  0x4d   : > { %435 = vrot.lane.b32.xlu1 %v3476_v3, %s4843_s30  ;;  %433 = vrot.lane.b32.xlu0 %v3466_v1, %s4843_s30 }
  0x51   : > { %439 = vrot.lane.b32.xlu1 %v3473_v2, %s4843_s30  ;;  %437 = vrot.lane.b32.xlu0 %v3463_v0, %s4843_s30  ;;  %s5020_s30 = smov 113  }
  0x55   : > { %394 = vrot.lane.b32.xlu1 %v3476_v3, %s4845_s12  ;;  %392 = vrot.lane.b32.xlu0 %v3466_v1, %s4845_s12 }
  0x59   : > { %398 = vrot.lane.b32.xlu1 %v3473_v2, %s4845_s12  ;;  %396 = vrot.lane.b32.xlu0 %v3463_v0, %s4845_s12 }
  0x8f   : > { %v678_v13 = vpop.permute.xlu1 %677  ;;  %v674_v14 = vpop.permute.xlu0 %673 }
  0x93   : > { %v680_v19 = vpop.permute.xlu1 %679  ;;  %v676_v20 = vpop.permute.xlu0 %675 }
  0x94   : > { %v682_v21 = vsel %vm681_vm0, %v678_v13, %v680_v19  ;;  %v684_v22 = vsel %vm681_vm0, %v674_v14, %v676_v20  ;;  %v683_v23 = vsel %vm681_vm0, %v676_v20, %v678_v13  ;;  %v685_v24 = vsel %vm681_vm0, %v680_v19, %v674_v14 }
  0x95   : > { %v710_v25 = vmul.f32 %v3561_v15, %v683_v23  ;;  %v712_v26 = vmul.f32 %v3564_v16, %v685_v24  ;;  %v709_v27 = vmul.f32 %v3567_v17, %v684_v22  ;;  %v711_v28 = vmul.f32 %v3570_v18, %v682_v21  ;;  %v2815_v21 = vld [vmem:[%s4834_s3 + $0xc] sm:$0xf]  ;;  %v4146_v18 = vld [vmem:[%s4835_s4 + $0x80] sm:$0xff] }
  0x96   : > { %v3645_v13 = vrot.slane %v2816_v5, %v3548_v9  ;;  %v3648_v14 = vrot.slane %v2816_v5, %v3545_v8  ;;  %v3651_v19 = vrot.slane %v2816_v5, %v3554_v11  ;;  %v3654_v20 = vrot.slane %v2816_v5, %v3551_v10  ;;  %v4139_v16 = vld [vmem:[%s4835_s4 + $0x188] sm:$0xff]  ;;  %5001 = vst [vmem:[#allocation56_spill] sm:$0xff] %v4146_v18  ;;  %v4158_v15 = vld [vmem:[%s4835_s4] sm:$0xff] }
  0x97   : > { %v636_v29 = vpop.permute.xlu1 %635  ;;  %732 = vmatprep.subr.mxu0 %v710_v25  ;;  %803 = vmatprep.subr.mxu1 %v712_v26  ;;  %v634_v31 = vpop.permute.xlu0 %633  ;;  %5000 = vst [vmem:[#allocation55_spill] sm:$0xff] %v4139_v16  ;;  %v4151_v17 = vld [vmem:[%s4835_s4 + $0x108] sm:$0xff]  ;;  %5003 = vst [vmem:[#allocation58_spill] sm:$0xff] %v4158_v15 }
  0x98   : > { %733 = vmatpush1.msra.mxu0 %v709_v27  ;;  %804 = vmatpush1.msra.mxu1 %v711_v28  ;;  %v644_v36 = vsel %vm641_vm1, %v634_v31, %v636_v29  ;;  %4964 = vst [vmem:[#allocation19_spill] sm:$0xff] %v3645_v13  ;;  %4965 = vst [vmem:[#allocation20_spill] sm:$0xff] %v3648_v14 }
  0x99   : > { %v669_v45 = vmul.f32 %v3598_v35, %v644_v36  ;;  %4966 = vst [vmem:[#allocation21_spill] sm:$0xff] %v3651_v19  ;;  %4967 = vst [vmem:[#allocation22_spill] sm:$0xff] %v3654_v20  ;;  %v4123_v35 = vld [vmem:[%s4835_s4 + $0x110] sm:$0xff] }
  0x9a   : > { %4998 = vst [vmem:[#allocation53_spill] sm:$0xff] %v4123_v35  ;;  %5002 = vst [vmem:[#allocation57_spill] sm:$0xff] %v4151_v17 }
  0x9b   : > { %v640_v37 = vpop.permute.xlu1 %639  ;;  %v638_v38 = vpop.permute.xlu0 %637 }
  0x9c   : > { %v645_v39 = vsel %vm641_vm1, %v640_v37, %v634_v31  ;;  %v642_v40 = vsel %vm641_vm1, %v638_v38, %v640_v37  ;;  %v643_v41 = vsel %vm641_vm1, %v636_v29, %v638_v38  ;;  %v3672_v31 = vrot.slane %v2815_v21, %v3545_v8 }
  0x9d   : > { %v672_v42 = vmul.f32 %v3589_v32, %v645_v39  ;;  %v670_v43 = vmul.f32 %v3592_v33, %v643_v41  ;;  %v671_v44 = vmul.f32 %v3595_v34, %v642_v40  ;;  %v3678_v40 = vrot.slane %v2815_v21, %v3551_v10  ;;  %v4111_v32 = vld [vmem:[%s4835_s4 + $0x190] sm:$0xff]  ;;  %v4118_v34 = vld [vmem:[%s4835_s4 + $0x88] sm:$0xff] }
  0x9e   : > { %4968 = vst [vmem:[#allocation23_spill] sm:$0xff] %v3672_v31  ;;  %4996 = vst [vmem:[#allocation51_spill] sm:$0xff] %v4111_v32  ;;  %v4134_v33 = vld [vmem:[%s4835_s4 + $0x8] sm:$0xff] }
  0x9f   : > { %v596_v46 = vpop.permute.xlu1 %595  ;;  %734 = vmatprep.subr.mxu0 %v670_v43  ;;  %805 = vmatprep.subr.mxu1 %v672_v42  ;;  %v594_v48 = vpop.permute.xlu0 %593  ;;  %4969 = vst [vmem:[#allocation24_spill] sm:$0xff] %v3678_v40  ;;  %v3683_v42 = vrot.slane %v2815_v21, %v3554_v11  ;;  %v3686_v43 = vrot.slane %v2815_v21, %v3548_v9  ;;  %4997 = vst [vmem:[#allocation52_spill] sm:$0xff] %v4118_v34 }
  0xa0   : > { %735 = vmatpush1.msra.mxu0 %v669_v45  ;;  %806 = vmatpush1.msra.mxu1 %v671_v44  ;;  %v604_v53 = vsel %vm601_vm2, %v594_v48, %v596_v46  ;;  %v2814_v44 = vld [vmem:[%s4834_s3 + $0x8] sm:$0xf]  ;;  %4999 = vst [vmem:[#allocation54_spill] sm:$0xff] %v4134_v33 }
  0xa1   : > { %v629_v62 = vmul.f32 %v3626_v52, %v604_v53  ;;  %4970 = vst [vmem:[#allocation25_spill] sm:$0xff] %v3683_v42  ;;  %4971 = vst [vmem:[#allocation26_spill] sm:$0xff] %v3686_v43  ;;  %v3705_v53 = vrot.slane %v2814_v44, %v3545_v8  ;;  %v4099_v52 = vld [vmem:[%s4835_s4 + $0x118] sm:$0xff] }
  0xa2   : > { %4994 = vst [vmem:[#allocation49_spill] sm:$0xff] %v4099_v52 }
  0xa3   : > { %v600_v54 = vpop.permute.xlu1 %599  ;;  %v598_v55 = vpop.permute.xlu0 %597  ;;  %4972 = vst [vmem:[#allocation27_spill] sm:$0xff] %v3705_v53 }
  0xa4   : > { %v605_v56 = vsel %vm601_vm2, %v600_v54, %v594_v48  ;;  %v602_v57 = vsel %vm601_vm2, %v598_v55, %v600_v54  ;;  %v603_v58 = vsel %vm601_vm2, %v596_v46, %v598_v55 }
  0xa5   : > { %v632_v59 = vmul.f32 %v3617_v49, %v605_v56  ;;  %v630_v60 = vmul.f32 %v3620_v50, %v603_v58  ;;  %v631_v61 = vmul.f32 %v3623_v51, %v602_v57  ;;  %v3711_v58 = vrot.slane %v2814_v44, %v3551_v10  ;;  %v4087_v49 = vld [vmem:[%s4835_s4 + $0x198] sm:$0xff]  ;;  %v4094_v51 = vld [vmem:[%s4835_s4 + $0x90] sm:$0xff] }
  0xa6   : > { %4992 = vst [vmem:[#allocation47_spill] sm:$0xff] %v4087_v49  ;;  %4993 = vst [vmem:[#allocation48_spill] sm:$0xff] %v4094_v51  ;;  %v4106_v50 = vld [vmem:[%s4835_s4 + $0x10] sm:$0xff] }
  0xa7   : > { %v556_v63 = vpop.permute.xlu1 %555  ;;  %736 = vmatprep.subr.mxu0 %v630_v60  ;;  %807 = vmatprep.subr.mxu1 %v632_v59  ;;  %v554_v12 = vpop.permute.xlu0 %553  ;;  %4973 = vst [vmem:[#allocation28_spill] sm:$0xff] %v3711_v58  ;;  %v3714_v59 = vrot.slane %v2814_v44, %v3554_v11  ;;  %v3717_v60 = vrot.slane %v2814_v44, %v3548_v9  ;;  %4995 = vst [vmem:[#allocation50_spill] sm:$0xff] %v4106_v50 }
  0xa8   : > { %737 = vmatpush1.msra.mxu0 %v629_v62  ;;  %808 = vmatpush1.msra.mxu1 %v631_v61  ;;  %v564_v22 = vsel %vm561_vm3, %v554_v12, %v556_v63  ;;  %v2813_v61 = vld [vmem:[%s4834_s3 + $0x4] sm:$0xf] }
  0xa9   : > { %v589_v36 = vmul.f32 %v3654_v20, %v564_v22  ;;  %4974 = vst [vmem:[#allocation29_spill] sm:$0xff] %v3714_v59  ;;  %4975 = vst [vmem:[#allocation30_spill] sm:$0xff] %v3717_v60  ;;  %v4075_v20 = vld [vmem:[%s4835_s4 + $0x120] sm:$0xff] }
  0xaa   : > { %4990 = vst [vmem:[#allocation45_spill] sm:$0xff] %v4075_v20 }
  0xab   : > { %v560_v23 = vpop.permute.xlu1 %559  ;;  %v558_v24 = vpop.permute.xlu0 %557 }
  0xac   : > { %v565_v25 = vsel %vm561_vm3, %v560_v23, %v554_v12  ;;  %v562_v26 = vsel %vm561_vm3, %v558_v24, %v560_v23  ;;  %v563_v27 = vsel %vm561_vm3, %v556_v63, %v558_v24 }
  0xad   : > { %v592_v28 = vmul.f32 %v3645_v13, %v565_v25  ;;  %v590_v29 = vmul.f32 %v3648_v14, %v563_v27  ;;  %v591_v30 = vmul.f32 %v3651_v19, %v562_v26  ;;  %v3733_v25 = vrot.slane %v2813_v61, %v3545_v8  ;;  %v4063_v13 = vld [vmem:[%s4835_s4 + $0x1a0] sm:$0xff]  ;;  %v4070_v19 = vld [vmem:[%s4835_s4 + $0x98] sm:$0xff] }
  0xae   : > { %4988 = vst [vmem:[#allocation43_spill] sm:$0xff] %v4063_v13  ;;  %4989 = vst [vmem:[#allocation44_spill] sm:$0xff] %v4070_v19  ;;  %v4082_v14 = vld [vmem:[%s4835_s4 + $0x18] sm:$0xff] }
  0xaf   : > { %v516_v37 = vpop.permute.xlu1 %515  ;;  %738 = vmatprep.subr.mxu0 %v590_v29  ;;  %809 = vmatprep.subr.mxu1 %v592_v28  ;;  %v514_v38 = vpop.permute.xlu0 %513  ;;  %4976 = vst [vmem:[#allocation31_spill] sm:$0xff] %v3733_v25  ;;  %4991 = vst [vmem:[#allocation46_spill] sm:$0xff] %v4082_v14 }
  0xb0   : > { %v524_v39 = vsel %vm521_vm4, %v514_v38, %v516_v37  ;;  %739 = vmatpush1.msra.mxu0 %v589_v36  ;;  %810 = vmatpush1.msra.mxu1 %v591_v30  ;;  %v3739_v30 = vrot.slane %v2813_v61, %v3551_v10  ;;  %v3742_v36 = vrot.slane %v2813_v61, %v3554_v11 }
  0xb1   : > { %v550_v41 = vmul.f32 %v3672_v31, %v524_v39  ;;  %740 = vmatprep.subr.mxu0 %v3476_v3  ;;  %811 = vmatprep.subr.mxu1 %v3473_v2  ;;  %v4058_v31 = vld [vmem:[%s4835_s4 + $0x20] sm:$0xff] }
  0xb2   : > { %741 = vmatpush1.msra.mxu0 %v3466_v1  ;;  %812 = vmatpush1.msra.mxu1 %v3463_v0  ;;  %4977 = vst [vmem:[#allocation32_spill] sm:$0xff] %v3739_v30  ;;  %4978 = vst [vmem:[#allocation33_spill] sm:$0xff] %v3742_v36 }
  0xb3   : > { %v520_v45 = vpop.permute.xlu1 %519  ;;  %742 = vmatprep.subr.mxu0 %v550_v41  ;;  %v518_v46 = vpop.permute.xlu0 %517  ;;  %4987 = vst [vmem:[#allocation42_spill] sm:$0xff] %v4058_v31 }
  0xb4   : > { %v525_v3 = vsel %vm521_vm4, %v520_v45, %v514_v38  ;;  %v522_v47 = vsel %vm521_vm4, %v518_v46, %v520_v45  ;;  %v523_v2 = vsel %vm521_vm4, %v516_v37, %v518_v46  ;;  %v3745_v37 = vrot.slane %v2813_v61, %v3548_v9  ;;  %v407_v38 = vld [vmem:[%s4834_s3] sm:$0xf] }
  0xb5   : > { %v549_v0 = vmul.f32 %v3678_v40, %v525_v3  ;;  %v551_v1 = vmul.f32 %v3683_v42, %v523_v2  ;;  %v552_v48 = vmul.f32 %v3686_v43, %v522_v47  ;;  %v3773_v61 = vrot.slane %v407_v38, %v3548_v9  ;;  %v713_v9 = vld [vmem:[%s4832_s1] sm:$0xff]  ;;  %v4039_v42 = vld [vmem:[%s4835_s4 + $0x1a8] sm:$0xff] }
  0xb6   : > { %4979 = vst [vmem:[#allocation34_spill] sm:$0xff] %v3745_v37  ;;  %4984 = vst [vmem:[#allocation39_spill] sm:$0xff] %v4039_v42  ;;  %v4046_v43 = vld [vmem:[%s4835_s4 + $0xa0] sm:$0xff]  ;;  %v4051_v40 = vld [vmem:[%s4835_s4 + $0x128] sm:$0xff] }
  0xb7   : > { %v476_v54 = vpop.permute.xlu1 %475  ;;  %743 = vmatpush1.msra.mxu0 %v549_v0  ;;  %813 = vmatprep.subr.mxu1 %v552_v48  ;;  %v474_v55 = vpop.permute.xlu0 %473  ;;  %v3761_v0 = vrot.slane %v407_v38, %v3545_v8  ;;  %4983 = vst [vmem:[#allocation38_spill] sm:$0xff] %v3773_v61  ;;  %4985 = vst [vmem:[#allocation40_spill] sm:$0xff] %v4046_v43 }
  0xb8   : > { %v484_v56 = vsel %vm481_vm5, %v474_v55, %v476_v54  ;;  %814 = vmatpush1.msra.mxu1 %v551_v1  ;;  %4986 = vst [vmem:[#allocation41_spill] sm:$0xff] %v4051_v40 }
  0xb9   : > { %v510_v57 = vmul.f32 %v3705_v53, %v484_v56  ;;  %4980 = vst [vmem:[#allocation35_spill] sm:$0xff] %v3761_v0  ;;  %v3767_v56 = vrot.slane %v407_v38, %v3551_v10  ;;  %v4034_v53 = vld [vmem:[%s4835_s4 + $0x28] sm:$0xff] }
  0xbb   : > { %v480_v62 = vpop.permute.xlu1 %479  ;;  %744 = vmatprep.subr.mxu0 %v510_v57  ;;  %v478_v63 = vpop.permute.xlu0 %477  ;;  %4981 = vst [vmem:[#allocation36_spill] sm:$0xff] %v3767_v56  ;;  %v3770_v57 = vrot.slane %v407_v38, %v3554_v11  ;;  %v3830_v38 = vld [vmem:[%s4835_s4 + $0xe8] sm:$0xff] }
  0xbc   : > { %v485_v5 = vsel %vm481_vm5, %v480_v62, %v474_v55  ;;  %v482_v12 = vsel %vm481_vm5, %v478_v63, %v480_v62  ;;  %v483_v21 = vsel %vm481_vm5, %v476_v54, %v478_v63 }
  0xbd   : > { %v509_v22 = vmul.f32 %v3711_v58, %v485_v5  ;;  %v511_v23 = vmul.f32 %v3714_v59, %v483_v21  ;;  %v512_v24 = vmul.f32 %v3717_v60, %v482_v12  ;;  %4982 = vst [vmem:[#allocation37_spill] sm:$0xff] %v3770_v57  ;;  %v4015_v59 = vld [vmem:[%s4835_s4 + $0x1b0] sm:$0xff]  ;;  %v4022_v60 = vld [vmem:[%s4835_s4 + $0xa8] sm:$0xff] }
  0xbe   : > { %v4027_v58 = vld [vmem:[%s4835_s4 + $0x130] sm:$0xff] }
  0xbf   : > { %v436_v26 = vpop.permute.xlu1 %435  ;;  %745 = vmatpush1.msra.mxu0 %v509_v22  ;;  %815 = vmatprep.subr.mxu1 %v512_v24  ;;  %v434_v27 = vpop.permute.xlu0 %433  ;;  %v3790_v22 = vld [vmem:[%s4835_s4 + $0xf8] sm:$0xff] }
  0xc0   : > { %v444_v28 = vsel %vm441_vm6, %v434_v27, %v436_v26  ;;  %816 = vmatpush1.msra.mxu1 %v511_v23  ;;  %v3795_v23 = vld [vmem:[%s4835_s4 + $0x78] sm:$0xff] }
  0xc1   : > { %v470_v29 = vmul.f32 %v3733_v25, %v444_v28  ;;  %v3800_v24 = vld [vmem:[%s4835_s4 + $0x1f8] sm:$0xff]  ;;  %v3818_v28 = vld [vmem:[%s4835_s4 + $0x70] sm:$0xff] }
  0xc2   : > { %v4010_v25 = vld [vmem:[%s4835_s4 + $0x30] sm:$0xff] }
  0xc3   : > { %v440_v39 = vpop.permute.xlu1 %439  ;;  %746 = vmatprep.subr.mxu0 %v470_v29  ;;  %v438_v41 = vpop.permute.xlu0 %437  ;;  %v3823_v29 = vld [vmem:[%s4835_s4 + $0x1f0] sm:$0xff] }
  0xc4   : > { %v445_v44 = vsel %vm441_vm6, %v440_v39, %v434_v27  ;;  %v442_v45 = vsel %vm441_vm6, %v438_v41, %v440_v39  ;;  %v443_v46 = vsel %vm441_vm6, %v436_v26, %v438_v41  ;;  %v3806_v26 = vld [vmem:[%s4835_s4 + $0xf0] sm:$0xff]  ;;  %v3811_v27 = vld [vmem:[%s4835_s4 + $0x178] sm:$0xff]  ;;  %v3842_v41 = vld [vmem:[%s4835_s4 + $0x68] sm:$0xff] }
  0xc5   : > { %v469_v3 = vmul.f32 %v3739_v30, %v445_v44  ;;  %v471_v47 = vmul.f32 %v3742_v36, %v443_v46  ;;  %v472_v2 = vmul.f32 %v3745_v37, %v442_v45  ;;  %v3835_v39 = vld [vmem:[%s4835_s4 + $0x170] sm:$0xff]  ;;  %v3847_v44 = vld [vmem:[%s4835_s4 + $0x1e8] sm:$0xff]  ;;  %v3854_v45 = vld [vmem:[%s4835_s4 + $0xe0] sm:$0xff] }
  0xc6   : > { %v3859_v46 = vld [vmem:[%s4835_s4 + $0x168] sm:$0xff]  ;;  %v3991_v36 = vld [vmem:[%s4835_s4 + $0x1b8] sm:$0xff]  ;;  %v3998_v37 = vld [vmem:[%s4835_s4 + $0xb0] sm:$0xff] }
  0xc7   : > { %v395_v1 = vpop.permute.xlu1 %394  ;;  %747 = vmatpush1.msra.mxu0 %v469_v3  ;;  %817 = vmatprep.subr.mxu1 %v472_v2  ;;  %v393_v48 = vpop.permute.xlu0 %392  ;;  %v3866_v3 = vld [vmem:[%s4835_s4 + $0x60] sm:$0xff]  ;;  %v3878_v2 = vld [vmem:[%s4835_s4 + $0xd8] sm:$0xff] }
  0xc8   : > { %v405_v54 = vsel %vm402_vm7, %v393_v48, %v395_v1  ;;  %818 = vmatpush1.msra.mxu1 %v471_v47  ;;  %v3871_v47 = vld [vmem:[%s4835_s4 + $0x1e0] sm:$0xff]  ;;  %v4003_v30 = vld [vmem:[%s4835_s4 + $0x138] sm:$0xff] }
  0xc9   : > { %v430_v55 = vmul.f32 %v3761_v0, %v405_v54  ;;  %v3895_v54 = vld [vmem:[%s4835_s4 + $0x1d8] sm:$0xff] }
  0xca   : > { %v3986_v0 = vld [vmem:[%s4835_s4 + $0x38] sm:$0xff] }
  0xcb   : > { %v399_v8 = vpop.permute.xlu1 %398  ;;  %748 = vmatprep.subr.mxu0 %v430_v55  ;;  %v397_v62 = vpop.permute.xlu0 %396  ;;  %v3902_v55 = vld [vmem:[%s4835_s4 + $0xd0] sm:$0xff] }
  0xcc   : > { %v406_v63 = vsel %vm402_vm7, %v399_v8, %v393_v48  ;;  %v403_v5 = vsel %vm402_vm7, %v397_v62, %v399_v8  ;;  %v404_v12 = vsel %vm402_vm7, %v395_v1, %v397_v62  ;;  %v3883_v1 = vld [vmem:[%s4835_s4 + $0x160] sm:$0xff]  ;;  %v3890_v48 = vld [vmem:[%s4835_s4 + $0x58] sm:$0xff]  ;;  %v3914_v62 = vld [vmem:[%s4835_s4 + $0x50] sm:$0xff] }
  0xcd   : > { %v429_v10 = vmul.f32 %v3767_v56, %v406_v63  ;;  %v431_v11 = vmul.f32 %v3770_v57, %v404_v12  ;;  %v432_v21 = vmul.f32 %v3773_v61, %v403_v5  ;;  %v3907_v8 = vld [vmem:[%s4835_s4 + $0x158] sm:$0xff]  ;;  %v3919_v63 = vld [vmem:[%s4835_s4 + $0x1d0] sm:$0xff]  ;;  %v3926_v5 = vld [vmem:[%s4835_s4 + $0xc8] sm:$0xff] }
  0xce   : > { %v3931_v12 = vld [vmem:[%s4835_s4 + $0x150] sm:$0xff]  ;;  %v3967_v57 = vld [vmem:[%s4835_s4 + $0x1c0] sm:$0xff]  ;;  %v3974_v61 = vld [vmem:[%s4835_s4 + $0xb8] sm:$0xff] }
  0xcf   : > { %749 = vmatpush1.msra.mxu0 %v429_v10  ;;  %819 = vmatprep.subr.mxu1 %v432_v21  ;;  %v3938_v10 = vld [vmem:[%s4835_s4 + $0x48] sm:$0xff]  ;;  %v3950_v21 = vld [vmem:[%s4835_s4 + $0xc0] sm:$0xff] }
  0xd0   : > { %2820 = vmatmul.mubr.msk.f32.vlgmr.msra.gmra.mxu0 %vm714_vm8, %v713_v9  ;;  %820 = vmatpush1.msra.mxu1 %v431_v11  ;;  %v3943_v11 = vld [vmem:[%s4835_s4 + $0x1c8] sm:$0xff]  ;;  %v3979_v56 = vld [vmem:[%s4835_s4 + $0x140] sm:$0xff] }
  0xd1   : > { %2821 = vmatmul.mubr.msk.f32.vlgmr.msra.gmra.mxu1 %vm714_vm8, %v713_v9  ;;  %2858 = vmatprep.subr.mxu0 %v3790_v22  ;;  %v3955_v9 = vld [vmem:[%s4835_s4 + $0x148] sm:$0xff] }
  0xd2   : > { %2859 = vmatpush3.msra.mxu0 %v3795_v23  ;;  %2893 = vmatprep.subr.mxu1 %v3800_v24 }
  0xd3   : > { %2860 = vmatprep.subr.mxu0 %v3806_v26  ;;  %2894 = vmatpush3.msra.mxu1 %v3811_v27 }
  0xd4   : > { %2861 = vmatpush3.msra.mxu0 %v3818_v28  ;;  %2895 = vmatprep.subr.mxu1 %v3823_v29 }
  0xd5   : > { %2862 = vmatprep.subr.mxu0 %v3830_v38  ;;  %2896 = vmatpush3.msra.mxu1 %v3835_v39 }
  0xd6   : > { %2863 = vmatpush3.msra.mxu0 %v3842_v41  ;;  %2897 = vmatprep.subr.mxu1 %v3847_v44 }
  0xd7   : > { %2864 = vmatprep.subr.mxu0 %v3854_v45  ;;  %2898 = vmatpush3.msra.mxu1 %v3859_v46 }
  0xd8   : > { %2865 = vmatpush3.msra.mxu0 %v3866_v3  ;;  %2899 = vmatprep.subr.mxu1 %v3871_v47 }
  0xd9   : > { %2866 = vmatprep.subr.mxu0 %v3878_v2  ;;  %2900 = vmatpush3.msra.mxu1 %v3883_v1 }
  0xda   : > { %2867 = vmatpush3.msra.mxu0 %v3890_v48  ;;  %2901 = vmatprep.subr.mxu1 %v3895_v54 }
  0xdb   : > { %2868 = vmatprep.subr.mxu0 %v3902_v55  ;;  %2902 = vmatpush3.msra.mxu1 %v3907_v8 }
  0xdc   : > { %2869 = vmatpush3.msra.mxu0 %v3914_v62  ;;  %2903 = vmatprep.subr.mxu1 %v3919_v63 }
  0xdd   : > { %2870 = vmatprep.subr.mxu0 %v3926_v5  ;;  %2904 = vmatpush3.msra.mxu1 %v3931_v12 }
  0xde   : > { %2871 = vmatpush3.msra.mxu0 %v3938_v10  ;;  %2905 = vmatprep.subr.mxu1 %v3943_v11 }
  0xdf   : > { %2872 = vmatprep.subr.mxu0 %v3950_v21  ;;  %2906 = vmatpush3.msra.mxu1 %v3955_v9 }
  0xe0   : > { %2873 = vmatpush3.msra.mxu0 %v3962_v4  ;;  %2907 = vmatprep.subr.mxu1 %v3967_v57 }
  0xe1   : > { %2874 = vmatprep.subr.mxu0 %v3974_v61  ;;  %2908 = vmatpush3.msra.mxu1 %v3979_v56 }
  0xe2   : > { %2875 = vmatpush3.msra.mxu0 %v3986_v0  ;;  %2909 = vmatprep.subr.mxu1 %v3991_v36 }
  0xe3   : > { %2876 = vmatprep.subr.mxu0 %v3998_v37  ;;  %2910 = vmatpush3.msra.mxu1 %v4003_v30 }
  0xe4   : > { %2877 = vmatpush3.msra.mxu0 %v4010_v25  ;;  %2911 = vmatprep.subr.mxu1 %v4015_v59 }
  0xe5   : > { %2878 = vmatprep.subr.mxu0 %v4022_v60  ;;  %2912 = vmatpush3.msra.mxu1 %v4027_v58 }
  0xe6   : > { %2879 = vmatpush3.msra.mxu0 %v4034_v53  ;;  %2913 = vmatprep.subr.mxu1 %v4039_v42 }
  0xe7   : > { %2880 = vmatprep.subr.mxu0 %v4046_v43  ;;  %2914 = vmatpush3.msra.mxu1 %v4051_v40 }
  0xe8   : > { %2881 = vmatpush3.msra.mxu0 %v4058_v31  ;;  %2915 = vmatprep.subr.mxu1 %v4063_v13 }
  0xe9   : > { %2882 = vmatprep.subr.mxu0 %v4070_v19  ;;  %2916 = vmatpush3.msra.mxu1 %v4075_v20 }
  0xea   : > { %2883 = vmatpush3.msra.mxu0 %v4082_v14  ;;  %2917 = vmatprep.subr.mxu1 %v4087_v49 }
  0xeb   : > { %2884 = vmatprep.subr.mxu0 %v4094_v51  ;;  %2918 = vmatpush3.msra.mxu1 %v4099_v52 }
  0xec   : > { %2885 = vmatpush3.msra.mxu0 %v4106_v50  ;;  %2919 = vmatprep.subr.mxu1 %v4111_v32 }
  0xed   : > { %2886 = vmatprep.subr.mxu0 %v4118_v34  ;;  %2920 = vmatpush3.msra.mxu1 %v4123_v35 }
  0xee   : > { %2887 = vmatpush3.msra.mxu0 %v4134_v33  ;;  %2921 = vmatprep.subr.mxu1 %v4139_v16 }
  0xef   : > { %2888 = vmatprep.subr.mxu0 %v4146_v18  ;;  %2922 = vmatpush3.msra.mxu1 %v4151_v17 }
  0xf0   : > { %2889 = vmatpush3.msra.mxu0 %v4158_v15  ;;  %2923 = vmatprep.subr.mxu1 %v4163_v7 }
  0xf1   : > { %2924 = vmatpush3.msra.mxu1 %v4170_v6  ;;  %2928 = vmatprep.subr.mxu0 %v3790_v22 }
  0xf2   : > { %2963 = vmatprep.subr.mxu1 %v3800_v24 }
 0x190   : > { %v4175_v17 = vpop.f32.mrf.mxu0 }
 0x191   : > { %v4177_v18 = vpop.f32.mrf.mxu1 }
 0x192   : > { %v4179_v16 = vpop.f32.mrf.mxu0 }
 0x193   : > { %v1065_v7 = vmul.f32 %v4179_v16, %v4179_v16  ;;  %v4183_v15 = vpop.f32.mrf.mxu1  ;;  %988 = vmatprep.mubr.f32.mxu0 %v4179_v16 }
 0x194   : > { %v1067_v6 = vmul.f32 %v4183_v15, %v4183_v15  ;;  %989 = vmatmul.mubr.f32.vlgmr.msra.gmra.mxu0 %v4175_v17  ;;  %1058 = vmatprep.mubr.f32.mxu1 %v4183_v15 }
 0x195   : > { %2929 = vmatpush3.msra.mxu0 %v3795_v23  ;;  %1059 = vmatmul.mubr.f32.vlgmr.msra.gmra.mxu1 %v4177_v18 }
 0x196   : > { %2930 = vmatprep.subr.mxu0 %v3806_v26  ;;  %1132 = vmatprep.mubr.f32.mxu0 %v1065_v7  ;;  %v1064_v7 = vmul.f32 %v4175_v17, %v4175_v17 }
 0x197   : > { %2964 = vmatpush3.msra.mxu1 %v3811_v27  ;;  %2931 = vmatpush3.msra.mxu0 %v3818_v28 }
 0x198   : > { %2965 = vmatprep.subr.mxu1 %v3823_v29  ;;  %1202 = vmatprep.mubr.f32.mxu1 %v1067_v6  ;;  %v5006_v6 = vld [vmem:[#allocation55_spill] sm:$0xff] }
 0x199   : > { %2932 = vmatprep.subr.mxu0 %v3830_v38  ;;  %2966 = vmatpush3.msra.mxu1 %v3835_v39 }
 0x19a   : > { %2933 = vmatpush3.msra.mxu0 %v3842_v41  ;;  %2967 = vmatprep.subr.mxu1 %v3847_v44 }
 0x19b   : > { %2934 = vmatprep.subr.mxu0 %v3854_v45  ;;  %2968 = vmatpush3.msra.mxu1 %v3859_v46 }
 0x19c   : > { %2935 = vmatpush3.msra.mxu0 %v3866_v3  ;;  %2969 = vmatprep.subr.mxu1 %v3871_v47 }
 0x19d   : > { %2936 = vmatprep.subr.mxu0 %v3878_v2  ;;  %2970 = vmatpush3.msra.mxu1 %v3883_v1 }
 0x19e   : > { %2937 = vmatpush3.msra.mxu0 %v3890_v48  ;;  %2971 = vmatprep.subr.mxu1 %v3895_v54 }
 0x19f   : > { %2938 = vmatprep.subr.mxu0 %v3902_v55  ;;  %2972 = vmatpush3.msra.mxu1 %v3907_v8 }
 0x1a0   : > { %2939 = vmatpush3.msra.mxu0 %v3914_v62  ;;  %2973 = vmatprep.subr.mxu1 %v3919_v63 }
 0x1a1   : > { %2940 = vmatprep.subr.mxu0 %v3926_v5  ;;  %2974 = vmatpush3.msra.mxu1 %v3931_v12 }
 0x1a2   : > { %2941 = vmatpush3.msra.mxu0 %v3938_v10  ;;  %2975 = vmatprep.subr.mxu1 %v3943_v11 }
 0x1a3   : > { %2942 = vmatprep.subr.mxu0 %v3950_v21  ;;  %2976 = vmatpush3.msra.mxu1 %v3955_v9 }
 0x1a4   : > { %2943 = vmatpush3.msra.mxu0 %v3962_v4  ;;  %2977 = vmatprep.subr.mxu1 %v3967_v57 }
 0x1a5   : > { %2944 = vmatprep.subr.mxu0 %v3974_v61  ;;  %2978 = vmatpush3.msra.mxu1 %v3979_v56 }
 0x1a6   : > { %2945 = vmatpush3.msra.mxu0 %v3986_v0  ;;  %2979 = vmatprep.subr.mxu1 %v3991_v36 }
 0x1a7   : > { %2946 = vmatprep.subr.mxu0 %v3998_v37  ;;  %2980 = vmatpush3.msra.mxu1 %v4003_v30 }
 0x1a8   : > { %2947 = vmatpush3.msra.mxu0 %v4010_v25  ;;  %2981 = vmatprep.subr.mxu1 %v4015_v59 }
 0x1a9   : > { %2948 = vmatprep.subr.mxu0 %v4022_v60  ;;  %2982 = vmatpush3.msra.mxu1 %v4027_v58 }
 0x1aa   : > { %2949 = vmatpush3.msra.mxu0 %v4034_v53  ;;  %2983 = vmatprep.subr.mxu1 %v4039_v42 }
 0x1ab   : > { %2950 = vmatprep.subr.mxu0 %v4046_v43  ;;  %2984 = vmatpush3.msra.mxu1 %v4051_v40 }
 0x1ac   : > { %2951 = vmatpush3.msra.mxu0 %v4058_v31  ;;  %2985 = vmatprep.subr.mxu1 %v4063_v13  ;;  %v5014_v13 = vld [vmem:[#allocation5_spill] sm:$0xff] }
 0x1ad   : > { %2952 = vmatprep.subr.mxu0 %v4070_v19  ;;  %2986 = vmatpush3.msra.mxu1 %v4075_v20  ;;  %v4272_v20 = vld [vmem:[%s4837_s6] sm:$0xff] }
 0x1ae   : > { %2953 = vmatpush3.msra.mxu0 %v4082_v14  ;;  %2987 = vmatprep.subr.mxu1 %v4087_v49  ;;  %v5007_v49 = vld [vmem:[#allocation56_spill] sm:$0xff]  ;;  %5013 = vst [vmem:[#allocation61_spill] sm:$0xff] %v4272_v20 }
 0x1af   : > { %2954 = vmatprep.subr.mxu0 %v4094_v51  ;;  %2988 = vmatpush3.msra.mxu1 %v4099_v52  ;;  %v5008_v51 = vld [vmem:[#allocation57_spill] sm:$0xff]  ;;  %v5009_v52 = vld [vmem:[#allocation58_spill] sm:$0xff] }
 0x1b0   : > { %2955 = vmatpush3.msra.mxu0 %v4106_v50  ;;  %2989 = vmatprep.subr.mxu1 %v4111_v32  ;;  %v1066_v50 = vmul.f32 %v4177_v18, %v4177_v18  ;;  %v5010_v32 = vld [vmem:[#allocation59_spill] sm:$0xff] }
 0x1b1   : > { %2956 = vmatprep.subr.mxu0 %v4118_v34  ;;  %2990 = vmatpush3.msra.mxu1 %v4123_v35  ;;  %v5011_v35 = vld [vmem:[#allocation60_spill] sm:$0xff] }
 0x1b2   : > { %2957 = vmatpush3.msra.mxu0 %v4134_v33  ;;  %2991 = vmatprep.subr.mxu1 %v5006_v6  ;;  %v5012_v33 = vmov 0.0  }
 0x1b3   : > { %2958 = vmatprep.subr.mxu0 %v5007_v49  ;;  %2992 = vmatpush3.msra.mxu1 %v5008_v51 }
 0x1b4   : > { %2959 = vmatpush3.msra.mxu0 %v5009_v52  ;;  %2993 = vmatprep.subr.mxu1 %v5010_v32  ;;  %v1358_v52 = vld [vmem:[%s4838_s7] sm:$0xff] }
 0x1b5   : > { %1133 = vmatmul.mubr.f32.vlgmr.msra.gmra.mxu0 %v1064_v7  ;;  %2994 = vmatpush3.msra.mxu1 %v5011_v35  ;;  %v1365_v7 = vld [vmem:[%s4839_s8] sm:$0xff] }
 0x1b6   : > { %1203 = vmatmul.mubr.f32.vlgmr.msra.gmra.mxu1 %v1066_v50  ;;  %3146 = vmatprep.subr.mxu0 %v5012_v33  ;;  %v3345_v50 = vmov 0  }
 0x1b7   : > { %3151 = vmatprep.subr.mxu1 %v5012_v33  ;;  %3148 = vmatprep.mubr.msk.f32.mxu0 %vm3344_vm9, %v5012_v33 }
 0x1b8   : > { %3153 = vmatprep.mubr.msk.f32.mxu1 %vm3344_vm9, %v5012_v33  ;;  %3217 = vset.pattern.permute.xlu0 %v3345_v50 }
 0x1b9   : > { %3218 = vset.pattern.permute.xlu1 %v3345_v50  ;;  %1361 = vperm.xlu0 %3217, %v1358_v52  }
 0x1ba   : > { %1369 = vperm.xlu1 %3218, %v1365_v7  }
 0x235   : > { %v1370_v43 = vpop.permute.xlu1 %1369 }
 0x254   : > { %v2890_v35 = vpop.f32.mrf.mxu0 }
 0x255   : > { %v2925_v32 = vpop.f32.mrf.mxu1 }
 0x256   : > { %v2891_v51 = vpop.f32.mrf.mxu0 }
 0x257   : > { %v2892_v49 = vadd.f32 %v2891_v51, %v2890_v35  ;;  %v2926_v6 = vpop.f32.mrf.mxu1 }
 0x258   : > { %v2927_v34 = vadd.f32 %v2926_v6, %v2925_v32  ;;  %v1373_v6 = vld [vmem:[%s4836_s5] sm:$0xff] }
 0x259   : > { %v1375_v40 = vcombine.high %v1373_v6, %v1373_v6 }
 0x25a   : > { %v1061_v14 = vadd.f32 %v2927_v34, %v2892_v49  ;;  %v3346_v34 = vmov 1983009808  }
 0x25b   : > { %v1377_v49 = vunpack.c.l.s4 %v3346_v34 }
 0x25c   : > { %3147 = vmatpush3.msra.mxu0 %v1061_v14 }
 0x25d   : > { %3149 = vmatmul.mubr.msk.f32.vlgmr.msra.gmra.mxu0 %vm1209_vm10, %v4272_v20  ;;  %v1378_v14 = vunpack.c.0.s8 %v1377_v49 }
 0x25e   : > { %1469 = vmatprep.mubr.f32.mxu0 %v5012_v33 }
 0x25f   : > { %v1381_v31 = vsub.s32 %v1378_v14, %v5014_v13  ;;  %v1362_v14 = vpop.permute.xlu0 %1361 }
 0x275   : > { %v2960_v52 = vpop.f32.mrf.mxu0 }
 0x276   : > { %v2995_v7 = vpop.f32.mrf.mxu1 }
 0x277   : > { %v2961_v50 = vpop.f32.mrf.mxu0 }
 0x278   : > { %v2962_v19 = vadd.f32 %v2961_v50, %v2960_v52  ;;  %v2996_v35 = vpop.f32.mrf.mxu1  ;;  %v4284_v52 = vrot.slane %v1373_v6, %v1381_v31 }
 0x279   : > { %v2997_v51 = vadd.f32 %v2996_v35, %v2995_v7  ;;  %v4286_v7 = vrot.slane %v1375_v40, %v1381_v31 }
 0x27a   : > { %5015 = vst [vmem:[#allocation5_spill] sm:$0xff] %v4284_v52 }
 0x27b   : > { %v1205_v32 = vadd.f32 %v2997_v51, %v2962_v19  ;;  %5016 = vst [vmem:[#allocation62_spill] sm:$0xff] %v4286_v7  ;;  %v4290_v19 = vcombine.high %v4284_v52, %v4284_v52  ;;  %v4294_v50 = vcombine.high %v4286_v7, %v4286_v7 }
 0x27d   : > { %3152 = vmatpush3.msra.mxu1 %v1205_v32  ;;  %5017 = vst [vmem:[#allocation63_spill] sm:$0xff] %v4290_v19  ;;  %5018 = vst [vmem:[#allocation64_spill] sm:$0xff] %v4294_v50  ;;  %2824 = vmatprep.subr.msk.mxu0 %vm1396_vm11, %v4290_v19 }
 0x27e   : > { %3154 = vmatmul.mubr.msk.f32.vlgmr.msra.gmra.mxu1 %vm1209_vm10, %v4272_v20  ;;  %2827 = vmatprep.subr.msk.mxu1 %vm1396_vm11, %v4294_v50 }
 0x27f   : > { %1540 = vmatprep.mubr.f32.mxu1 %v5012_v33  ;;  %2825 = vmatpush1.msk.msra.mxu0 %vm1396_vm11, %v4284_v52 }
 0x280   : > { %2828 = vmatpush1.msk.msra.mxu1 %vm1396_vm11, %v4286_v7  ;;  %2830 = vmatprep.subr.msk.mxu0 %vm1396_vm11, %v4290_v19 }
 0x281   : > { %2833 = vmatprep.subr.msk.mxu1 %vm1396_vm11, %v4294_v50 }
 0x31d   : > { %v1279_v13 = vpop.f32.mrf.mxu0 }
 0x31e   : > { %v1353_v40 = vmul.f32 %v1279_v13, %v1279_v13 }
 0x31f   : > { %v3150_v31 = vpop.f32.mrf.mxu0 }
 0x33e   : > { %v1349_v35 = vpop.f32.mrf.mxu1 }
 0x33f   : > { %v1354_v51 = vsub.f32 %v1349_v35, %v1353_v40 }
 0x340   : > { %v3155_v32 = vpop.f32.mrf.mxu1 }
 0x341   : > { %v1355_v34 = vmax.f32 %v1354_v51, 0.0 }
 0x343   : > { %v1356_v49 = vadd.f32 1e-05, %v1355_v34 }
 0x345   : > { %3220 = vrsqrt.f32 %v1356_v49 }
 0x352   : > { %v3221_v6 = vpop.eup %3220 }
 0x353   : > { %v1364_v20 = vmul.f32 %v3221_v6, %v1362_v14 }
 0x355   : > { %2826 = vmatmul.mubr.msk.f32.vlgmr.msra.gmra.mxu0 %vm1392_vm12, %v1364_v20  ;;  %2829 = vmatmul.mubr.msk.f32.vlgmr.msra.gmra.mxu1 %vm1392_vm12, %v1364_v20  ;;  %v1366_v19 = vmul.f32 %v1364_v20, %v1279_v13 }
 0x356   : > { %2831 = vmatpush1.msk.msra.mxu0 %vm1396_vm11, %v4284_v52  ;;  %1618 = vmatprep.mubr.f32.mxu0 %v5012_v33 }
 0x357   : > { %v1372_v31 = vsub.f32 %v1370_v43, %v1366_v19  ;;  %2834 = vmatpush1.msk.msra.mxu1 %vm1396_vm11, %v4286_v7  ;;  %1689 = vmatprep.mubr.f32.mxu1 %v5012_v33 }
 0x359   : > { %2832 = vmatmul.mubr.msk.f32.vlgmr.msra.gmra.mxu0 %vm1392_vm12, %v1372_v31  ;;  %2835 = vmatmul.mubr.msk.f32.vlgmr.msra.gmra.mxu1 %vm1392_vm12, %v1372_v31 }
 0x35a   : > { %1900 = vmatprep.mubr.f32.mxu0 %v5012_v33  ;;  %1971 = vmatprep.mubr.f32.mxu1 %v5012_v33 }
 0x415   : > { %v1471_v20 = vpop.f32.mrf.mxu0  ;;  %v1542_v13 = vpop.f32.mrf.mxu1 }
 0x416   : > { %v1547_v51 = vmul.f32 %v1471_v20, %v4175_v17  ;;  %v1549_v32 = vmul.f32 %v1542_v13, %v4177_v18  ;;  %v2414_v18 = vld [vmem:[%s4841_s10] sm:$0xff] }
 0x417   : > { %v1473_v40 = vpop.f32.mrf.mxu0  ;;  %v1544_v35 = vpop.f32.mrf.mxu1 }
 0x418   : > { %v1548_v34 = vmul.f32 %v1473_v40, %v4179_v16  ;;  %v1550_v31 = vmul.f32 %v1544_v35, %v4183_v15  ;;  %v2407_v15 = vld [vmem:[%s4840_s9] sm:$0xff]  ;;  %v5027_v35 = vld [vmem:[#allocation7_spill] sm:$0xff] }
 0x419   : > { %v1620_v43 = vpop.f32.mrf.mxu0  ;;  %v1691_v19 = vpop.f32.mrf.mxu1 }
 0x41a   : > { %v1696_v49 = vadd.f32 %v1620_v43, %v1547_v51  ;;  %v1698_v50 = vadd.f32 %v1691_v19, %v1549_v32  ;;  %v5028_v19 = vld [vmem:[#allocation9_spill] sm:$0xff] }
 0x41b   : > { %v1622_v14 = vpop.f32.mrf.mxu0  ;;  %v1693_v6 = vpop.f32.mrf.mxu1 }
 0x41c   : > { %v4324_v7 = vmax.f32 %v1696_v49, 0.0  ;;  %v1697_v52 = vadd.f32 %v1622_v14, %v1548_v34  ;;  %v1699_v42 = vadd.f32 %v1693_v6, %v1550_v31  ;;  %v4330_v17 = vmax.f32 %v1698_v50, 0.0  ;;  %v5029_v14 = vld [vmem:[#allocation10_spill] sm:$0xff]  ;;  %v5030_v31 = vld [vmem:[#allocation8_spill] sm:$0xff]  ;;  %v3238_v50 = vld [vmem:[%s4835_s4 + $0x1e0] sm:$0xff] }
 0x41e   : > { %v4326_v33 = vmax.f32 %v1697_v52, 0.0  ;;  %1816 = vrot.lane.b32.xlu1 %v4324_v7, %s3335_s15  ;;  %v4334_v16 = vmax.f32 %v1699_v42, 0.0 }
 0x420   : > { %1818 = vrot.lane.b32.xlu0 %v4326_v33, %s3335_s15 }
 0x422   : > { %1820 = vrot.lane.b32.xlu1 %v4330_v17, %s3335_s15 }
 0x424   : > { %1822 = vrot.lane.b32.xlu0 %v4334_v16, %s3335_s15  ;;  %s5021_s15 = smov 127  }
 0x426   : > { %1800 = vrot.lane.b32.xlu1 %v4324_v7, %s5019_s29 }
 0x428   : > { %1802 = vrot.lane.b32.xlu0 %v4326_v33, %s5019_s29 }
 0x42a   : > { %1804 = vrot.lane.b32.xlu1 %v4330_v17, %s5019_s29 }
 0x42c   : > { %1806 = vrot.lane.b32.xlu0 %v4334_v16, %s5019_s29 }
 0x42e   : > { %1784 = vrot.lane.b32.xlu1 %v4324_v7, %s5020_s30 }
 0x430   : > { %1786 = vrot.lane.b32.xlu0 %v4326_v33, %s5020_s30 }
 0x432   : > { %1788 = vrot.lane.b32.xlu1 %v4330_v17, %s5020_s30 }
 0x434   : > { %1790 = vrot.lane.b32.xlu0 %v4334_v16, %s5020_s30 }
 0x436   : > { %1768 = vrot.lane.b32.xlu1 %v4324_v7, %s5021_s15 }
 0x438   : > { %1770 = vrot.lane.b32.xlu0 %v4326_v33, %s5021_s15 }
 0x43a   : > { %1772 = vrot.lane.b32.xlu1 %v4330_v17, %s5021_s15 }
 0x43c   : > { %1774 = vrot.lane.b32.xlu0 %v4334_v16, %s5021_s15 }
 0x43e   : > { %1752 = vrot.lane.b32.xlu1 %v4324_v7, %s5022_s16 }
 0x440   : > { %1754 = vrot.lane.b32.xlu0 %v4326_v33, %s5022_s16 }
 0x442   : > { %1756 = vrot.lane.b32.xlu1 %v4330_v17, %s5022_s16 }
 0x444   : > { %1758 = vrot.lane.b32.xlu0 %v4334_v16, %s5022_s16  ;;  %s4794_s16 = scalar_lea.hbm %s4842_s11, %s2857_s0 }
 0x446   : > { %1736 = vrot.lane.b32.xlu1 %v4324_v7, %s5023_s22 }
 0x448   : > { %1738 = vrot.lane.b32.xlu0 %v4326_v33, %s5023_s22 }
 0x44a   : > { %1740 = vrot.lane.b32.xlu1 %v4330_v17, %s5023_s22 }
 0x44c   : > { %1742 = vrot.lane.b32.xlu0 %v4334_v16, %s5023_s22 }
 0x44e   : > { %1720 = vrot.lane.b32.xlu1 %v4324_v7, %s5024_s24 }
 0x450   : > { %1722 = vrot.lane.b32.xlu0 %v4326_v33, %s5024_s24 }
 0x452   : > { %1724 = vrot.lane.b32.xlu1 %v4330_v17, %s5024_s24 }
 0x454   : > { %1726 = vrot.lane.b32.xlu0 %v4334_v16, %s5024_s24 }
 0x456   : > { %1704 = vrot.lane.b32.xlu1 %v4324_v7, %s5025_s25 }
 0x458   : > { %1706 = vrot.lane.b32.xlu0 %v4326_v33, %s5025_s25 }
 0x45a   : > { %1708 = vrot.lane.b32.xlu1 %v4330_v17, %s5025_s25 }
 0x45c   : > { %1710 = vrot.lane.b32.xlu0 %v4334_v16, %s5025_s25  ;;  %s378_s25 = sand.u32 1, %s3325_s18  }
 0x45d   : > { %s2810_s12 = sshll.u32 %s378_s25, 5  ;;  %s2733_s21 = scalar_lea.sflag [#allocation3], %s378_s25 }
 0x45e   : > { %2410 = vperm.xlu1 %3218, %v2407_v15   ;;  %s380_s13 = scalar_lea.vmem [#allocation2], %s2810_s12 }
 0x45f   : > { %s2747_s29 = sshll.u32 %s380_s13, 4  ;;  %s2748_s29 = int_to_ptr.vmem [resolvable:$true] %s2747_s29 }
 0x460   : > { %2418 = vperm.xlu0 %3217, %v2414_v18   ;;  %s3273_s22 = scalar_lea.vmem %s2748_s29, 512 }
 0x461   : > { %p3274_p11 = scmp.ne.s32.totalorder %s2748_s29, %s3273_s22 }
 0x463   : > { %p3275_p12 = pnand %p3274_p11, %p3446_p5 }
 0x465   : > { %p3276_p13 = pneg %p3275_p12 }
 0x490   : > { %v1817_v42 = vpop.permute.xlu1 %1816 }
 0x492   : > { %v1819_v52 = vpop.permute.xlu0 %1818 }
 0x493   : > { %v1826_v20 = vsel %vm681_vm0, %v1817_v42, %v1819_v52 }
 0x494   : > { %v1821_v13 = vpop.permute.xlu1 %1820  ;;  %v1828_v32 = vmul.f32 %v1826_v20, %v5028_v19 }
 0x495   : > { %v1825_v40 = vsel %vm681_vm0, %v1819_v52, %v1821_v13 }
 0x496   : > { %v1829_v51 = vmul.f32 %v1825_v40, %v5027_v35  ;;  %v1823_v43 = vpop.permute.xlu0 %1822  ;;  %v5031_v35 = vld [vmem:[#allocation12_spill] sm:$0xff] }
 0x497   : > { %v1824_v34 = vsel %vm681_vm0, %v1821_v13, %v1823_v43  ;;  %v1827_v49 = vsel %vm681_vm0, %v1823_v43, %v1817_v42  ;;  %v5032_v43 = vld [vmem:[#allocation14_spill] sm:$0xff] }
 0x498   : > { %v1830_v6 = vmul.f32 %v1824_v34, %v5029_v14  ;;  %v1831_v15 = vmul.f32 %v1827_v49, %v5030_v31  ;;  %v1801_v18 = vpop.permute.xlu1 %1800  ;;  %1850 = vmatprep.subr.mxu0 %v1829_v51 }
 0x499   : > { %1851 = vmatpush1.msra.mxu0 %v1828_v32  ;;  %v5033_v32 = vld [vmem:[#allocation13_spill] sm:$0xff] }
 0x49a   : > { %1921 = vmatprep.subr.mxu1 %v1831_v15  ;;  %v1803_v52 = vpop.permute.xlu0 %1802 }
 0x49b   : > { %1922 = vmatpush1.msra.mxu1 %v1830_v6  ;;  %v1810_v40 = vsel %vm641_vm1, %v1801_v18, %v1803_v52  ;;  %v5034_v6 = vld [vmem:[#allocation11_spill] sm:$0xff] }
 0x49c   : > { %v1805_v20 = vpop.permute.xlu1 %1804  ;;  %v1812_v34 = vmul.f32 %v1810_v40, %v5032_v43 }
 0x49d   : > { %v1809_v13 = vsel %vm641_vm1, %v1803_v52, %v1805_v20 }
 0x49e   : > { %v1813_v19 = vmul.f32 %v1809_v13, %v5031_v35  ;;  %v1807_v42 = vpop.permute.xlu0 %1806  ;;  %v5035_v35 = vld [vmem:[#allocation16_spill] sm:$0xff] }
 0x49f   : > { %v1808_v49 = vsel %vm641_vm1, %v1805_v20, %v1807_v42  ;;  %v1811_v51 = vsel %vm641_vm1, %v1807_v42, %v1801_v18  ;;  %v5036_v42 = vld [vmem:[#allocation18_spill] sm:$0xff] }
 0x4a0   : > { %v1814_v14 = vmul.f32 %v1808_v49, %v5033_v32  ;;  %v1815_v31 = vmul.f32 %v1811_v51, %v5034_v6  ;;  %v1785_v15 = vpop.permute.xlu1 %1784  ;;  %1852 = vmatprep.subr.mxu0 %v1813_v19 }
 0x4a1   : > { %1853 = vmatpush1.msra.mxu0 %v1812_v34  ;;  %v5037_v34 = vld [vmem:[#allocation17_spill] sm:$0xff] }
 0x4a2   : > { %1923 = vmatprep.subr.mxu1 %v1815_v31  ;;  %v1787_v52 = vpop.permute.xlu0 %1786 }
 0x4a3   : > { %1924 = vmatpush1.msra.mxu1 %v1814_v14  ;;  %v1794_v13 = vsel %vm601_vm2, %v1785_v15, %v1787_v52  ;;  %v5038_v14 = vld [vmem:[#allocation15_spill] sm:$0xff] }
 0x4a4   : > { %v1789_v40 = vpop.permute.xlu1 %1788  ;;  %v1796_v49 = vmul.f32 %v1794_v13, %v5036_v42 }
 0x4a5   : > { %v1793_v20 = vsel %vm601_vm2, %v1787_v52, %v1789_v40 }
 0x4a6   : > { %v1797_v43 = vmul.f32 %v1793_v20, %v5035_v35  ;;  %v1791_v18 = vpop.permute.xlu0 %1790  ;;  %v5039_v35 = vld [vmem:[#allocation20_spill] sm:$0xff] }
 0x4a7   : > { %v1792_v51 = vsel %vm601_vm2, %v1789_v40, %v1791_v18  ;;  %v1795_v19 = vsel %vm601_vm2, %v1791_v18, %v1785_v15  ;;  %v5040_v18 = vld [vmem:[#allocation22_spill] sm:$0xff] }
 0x4a8   : > { %v1798_v32 = vmul.f32 %v1792_v51, %v5037_v34  ;;  %v1799_v6 = vmul.f32 %v1795_v19, %v5038_v14  ;;  %v1769_v31 = vpop.permute.xlu1 %1768  ;;  %1854 = vmatprep.subr.mxu0 %v1797_v43 }
 0x4a9   : > { %1855 = vmatpush1.msra.mxu0 %v1796_v49  ;;  %v5041_v49 = vld [vmem:[#allocation21_spill] sm:$0xff] }
 0x4aa   : > { %1925 = vmatprep.subr.mxu1 %v1799_v6  ;;  %v1771_v52 = vpop.permute.xlu0 %1770 }
 0x4ab   : > { %1926 = vmatpush1.msra.mxu1 %v1798_v32  ;;  %v1778_v20 = vsel %vm561_vm3, %v1769_v31, %v1771_v52  ;;  %v5042_v32 = vld [vmem:[#allocation19_spill] sm:$0xff] }
 0x4ac   : > { %v1773_v13 = vpop.permute.xlu1 %1772  ;;  %v1780_v51 = vmul.f32 %v1778_v20, %v5040_v18 }
 0x4ad   : > { %v1777_v40 = vsel %vm561_vm3, %v1771_v52, %v1773_v13 }
 0x4ae   : > { %v1781_v42 = vmul.f32 %v1777_v40, %v5039_v35  ;;  %v1775_v15 = vpop.permute.xlu0 %1774 }
 0x4af   : > { %v1776_v19 = vsel %vm561_vm3, %v1773_v13, %v1775_v15  ;;  %v1779_v43 = vsel %vm561_vm3, %v1775_v15, %v1769_v31  ;;  %v5043_v13 = vld [vmem:[#allocation23_spill] sm:$0xff] }
 0x4b0   : > { %v1782_v34 = vmul.f32 %v1776_v19, %v5041_v49  ;;  %v1783_v14 = vmul.f32 %v1779_v43, %v5042_v32  ;;  %v1753_v6 = vpop.permute.xlu1 %1752  ;;  %1856 = vmatprep.subr.mxu0 %v1781_v42  ;;  %v5046_v49 = vld [vmem:[#allocation25_spill] sm:$0xff]  ;;  %v5047_v32 = vld [vmem:[#allocation27_spill] sm:$0xff] }
 0x4b1   : > { %1857 = vmatpush1.msra.mxu0 %v1780_v51  ;;  %v5045_v51 = vld [vmem:[#allocation26_spill] sm:$0xff] }
 0x4b2   : > { %1858 = vmatprep.subr.mxu0 %v4326_v33  ;;  %1927 = vmatprep.subr.mxu1 %v1783_v14  ;;  %v1755_v52 = vpop.permute.xlu0 %1754 }
 0x4b3   : > { %v1762_v20 = vsel %vm521_vm4, %v1753_v6, %v1755_v52  ;;  %1859 = vmatpush1.msra.mxu0 %v4324_v7  ;;  %1928 = vmatpush1.msra.mxu1 %v1782_v34  ;;  %v5044_v7 = vld [vmem:[#allocation24_spill] sm:$0xff] }
 0x4b4   : > { %v1765_v40 = vmul.f32 %v1762_v20, %v5043_v13  ;;  %v1757_v31 = vpop.permute.xlu1 %1756  ;;  %1929 = vmatprep.subr.mxu1 %v4334_v16 }
 0x4b5   : > { %1930 = vmatpush1.msra.mxu1 %v4330_v17  ;;  %v1761_v35 = vsel %vm521_vm4, %v1755_v52, %v1757_v31 }
 0x4b6   : > { %1860 = vmatprep.subr.mxu0 %v1765_v40  ;;  %v1759_v33 = vpop.permute.xlu0 %1758  ;;  %v1766_v16 = vmul.f32 %v1761_v35, %v5046_v49  ;;  %v5051_v49 = vld [vmem:[#allocation31_spill] sm:$0xff] }
 0x4b7   : > { %v1760_v42 = vsel %vm521_vm4, %v1757_v31, %v1759_v33  ;;  %v1763_v15 = vsel %vm521_vm4, %v1759_v33, %v1753_v6  ;;  %v5048_v31 = vld [vmem:[#allocation28_spill] sm:$0xff]  ;;  %v5049_v33 = vld [vmem:[#allocation30_spill] sm:$0xff] }
 0x4b8   : > { %v1764_v18 = vmul.f32 %v1763_v15, %v5044_v7  ;;  %v1767_v19 = vmul.f32 %v1760_v42, %v5045_v51  ;;  %v1737_v43 = vpop.permute.xlu1 %1736  ;;  %v5050_v7 = vld [vmem:[#allocation29_spill] sm:$0xff] }
 0x4ba   : > { %1861 = vmatpush1.msra.mxu0 %v1764_v18  ;;  %1931 = vmatprep.subr.mxu1 %v1767_v19  ;;  %v1739_v17 = vpop.permute.xlu0 %1738 }
 0x4bb   : > { %v1746_v34 = vsel %vm481_vm5, %v1737_v43, %v1739_v17  ;;  %1932 = vmatpush1.msra.mxu1 %v1766_v16 }
 0x4bc   : > { %v1749_v14 = vmul.f32 %v1746_v34, %v5047_v32  ;;  %v1741_v52 = vpop.permute.xlu1 %1740 }
 0x4bd   : > { %v1745_v6 = vsel %vm481_vm5, %v1739_v17, %v1741_v52 }
 0x4be   : > { %1862 = vmatprep.subr.mxu0 %v1749_v14  ;;  %v1743_v20 = vpop.permute.xlu0 %1742  ;;  %v1750_v18 = vmul.f32 %v1745_v6, %v5050_v7  ;;  %v5055_v7 = vld [vmem:[#allocation35_spill] sm:$0xff] }
 0x4bf   : > { %v1744_v13 = vsel %vm481_vm5, %v1741_v52, %v1743_v20  ;;  %v1747_v40 = vsel %vm481_vm5, %v1743_v20, %v1737_v43  ;;  %v5052_v52 = vld [vmem:[#allocation32_spill] sm:$0xff]  ;;  %v5053_v20 = vld [vmem:[#allocation34_spill] sm:$0xff] }
 0x4c0   : > { %v1748_v35 = vmul.f32 %v1747_v40, %v5048_v31  ;;  %v1751_v42 = vmul.f32 %v1744_v13, %v5049_v33  ;;  %v1721_v15 = vpop.permute.xlu1 %1720  ;;  %v5054_v31 = vld [vmem:[#allocation33_spill] sm:$0xff] }
 0x4c2   : > { %1863 = vmatpush1.msra.mxu0 %v1748_v35  ;;  %1933 = vmatprep.subr.mxu1 %v1751_v42  ;;  %v1723_v51 = vpop.permute.xlu0 %1722 }
 0x4c3   : > { %v1730_v19 = vsel %vm441_vm6, %v1721_v15, %v1723_v51  ;;  %1934 = vmatpush1.msra.mxu1 %v1750_v18 }
 0x4c4   : > { %v1733_v16 = vmul.f32 %v1730_v19, %v5051_v49  ;;  %v1725_v17 = vpop.permute.xlu1 %1724 }
 0x4c5   : > { %v1729_v43 = vsel %vm441_vm6, %v1723_v51, %v1725_v17 }
 0x4c6   : > { %1864 = vmatprep.subr.mxu0 %v1733_v16  ;;  %v1727_v34 = vpop.permute.xlu0 %1726  ;;  %v1734_v35 = vmul.f32 %v1729_v43, %v5054_v31  ;;  %v3242_v31 = vld [vmem:[%s4835_s4 + $0x1d8] sm:$0xff] }
 0x4c7   : > { %v1728_v32 = vsel %vm441_vm6, %v1725_v17, %v1727_v34  ;;  %v1731_v14 = vsel %vm441_vm6, %v1727_v34, %v1721_v15  ;;  %v5056_v17 = vld [vmem:[#allocation36_spill] sm:$0xff]  ;;  %v5057_v34 = vld [vmem:[#allocation38_spill] sm:$0xff] }
 0x4c8   : > { %v1732_v6 = vmul.f32 %v1731_v14, %v5052_v52  ;;  %v1735_v13 = vmul.f32 %v1728_v32, %v5053_v20  ;;  %v1705_v40 = vpop.permute.xlu1 %1704  ;;  %v1832_v14 = vld [vmem:[%s4833_s2] sm:$0xff]  ;;  %v3239_v20 = vld [vmem:[%s4835_s4 + $0xd8] sm:$0xff] }
 0x4c9   : > { %v5058_v52 = vld [vmem:[#allocation37_spill] sm:$0xff] }
 0x4ca   : > { %1865 = vmatpush1.msra.mxu0 %v1732_v6  ;;  %1935 = vmatprep.subr.mxu1 %v1735_v13  ;;  %v1707_v33 = vpop.permute.xlu0 %1706  ;;  %v3240_v13 = vld [vmem:[%s4835_s4 + $0x160] sm:$0xff] }
 0x4cb   : > { %v1714_v42 = vsel %vm402_vm7, %v1705_v40, %v1707_v33  ;;  %1936 = vmatpush1.msra.mxu1 %v1734_v35  ;;  %v3243_v35 = vld [vmem:[%s4835_s4 + $0xd0] sm:$0xff] }
 0x4cc   : > { %v1717_v18 = vmul.f32 %v1714_v42, %v5055_v7  ;;  %v1709_v51 = vpop.permute.xlu1 %1708  ;;  %v3245_v42 = vld [vmem:[%s4835_s4 + $0x50] sm:$0xff] }
 0x4cd   : > { %v1713_v15 = vsel %vm402_vm7, %v1707_v33, %v1709_v51  ;;  %v3244_v33 = vld [vmem:[%s4835_s4 + $0x158] sm:$0xff]  ;;  %v3246_v7 = vld [vmem:[%s4835_s4 + $0x1d0] sm:$0xff] }
 0x4ce   : > { %1866 = vmatprep.subr.mxu0 %v1717_v18  ;;  %v1711_v19 = vpop.permute.xlu0 %1710  ;;  %v1718_v6 = vmul.f32 %v1713_v15, %v5058_v52  ;;  %v3247_v18 = vld [vmem:[%s4835_s4 + $0xc8] sm:$0xff]  ;;  %v3258_v52 = vld [vmem:[%s4835_s4 + $0x1b8] sm:$0xff] }
 0x4cf   : > { %v1712_v49 = vsel %vm402_vm7, %v1709_v51, %v1711_v19  ;;  %v1715_v16 = vsel %vm402_vm7, %v1711_v19, %v1705_v40  ;;  %v3241_v40 = vld [vmem:[%s4835_s4 + $0x58] sm:$0xff]  ;;  %v3248_v51 = vld [vmem:[%s4835_s4 + $0x150] sm:$0xff]  ;;  %v3249_v15 = vld [vmem:[%s4835_s4 + $0x48] sm:$0xff] }
 0x4d0   : > { %v1716_v43 = vmul.f32 %v1715_v16, %v5056_v17  ;;  %v1719_v32 = vmul.f32 %v1712_v49, %v5057_v34  ;;  %v3250_v19 = vld [vmem:[%s4835_s4 + $0x1c8] sm:$0xff]  ;;  %v3251_v49 = vld [vmem:[%s4835_s4 + $0xc0] sm:$0xff]  ;;  %v3255_v34 = vld [vmem:[%s4835_s4 + $0xb8] sm:$0xff] }
 0x4d1   : > { %v3252_v16 = vld [vmem:[%s4835_s4 + $0x148] sm:$0xff]  ;;  %v3253_v17 = vld [vmem:[%s4835_s4 + $0x40] sm:$0xff] }
 0x4d2   : > { %1867 = vmatpush1.msra.mxu0 %v1716_v43  ;;  %1937 = vmatprep.subr.mxu1 %v1719_v32  ;;  %v3254_v43 = vld [vmem:[%s4835_s4 + $0x1c0] sm:$0xff] }
 0x4d3   : > { %2836 = vmatmul.mubr.msk.f32.vlgmr.msra.gmra.mxu0 %vm714_vm8, %v1832_v14  ;;  %1938 = vmatpush1.msra.mxu1 %v1718_v6  ;;  %v3256_v32 = vld [vmem:[%s4835_s4 + $0x140] sm:$0xff]  ;;  %v3259_v6 = vld [vmem:[%s4835_s4 + $0xb0] sm:$0xff] }
 0x4d4   : > { %2837 = vmatmul.mubr.msk.f32.vlgmr.msra.gmra.mxu1 %vm714_vm8, %v1832_v14  ;;  %3002 = vmatprep.subr.mxu0 %v3790_v22  ;;  %v5072_v22 = vld [vmem:[#allocation52_spill] sm:$0xff] }
 0x4d5   : > { %3003 = vmatpush3.msra.mxu0 %v3795_v23  ;;  %3037 = vmatprep.subr.mxu1 %v3800_v24  ;;  %v5073_v23 = vld [vmem:[#allocation53_spill] sm:$0xff]  ;;  %v5074_v24 = vld [vmem:[#allocation54_spill] sm:$0xff]  ;;  %v3257_v14 = vld [vmem:[%s4835_s4 + $0x38] sm:$0xff] }
 0x4d6   : > { %3004 = vmatprep.subr.mxu0 %v3806_v26  ;;  %3038 = vmatpush3.msra.mxu1 %v3811_v27  ;;  %v5075_v26 = vld [vmem:[#allocation55_spill] sm:$0xff]  ;;  %v5076_v27 = vld [vmem:[#allocation56_spill] sm:$0xff] }
 0x4d7   : > { %3005 = vmatpush3.msra.mxu0 %v3818_v28  ;;  %3039 = vmatprep.subr.mxu1 %v3823_v29  ;;  %v5077_v28 = vld [vmem:[#allocation57_spill] sm:$0xff]  ;;  %v5078_v29 = vld [vmem:[#allocation58_spill] sm:$0xff] }
 0x4d8   : > { %3006 = vmatprep.subr.mxu0 %v3830_v38  ;;  %3040 = vmatpush3.msra.mxu1 %v3835_v39  ;;  %v5079_v38 = vld [vmem:[#allocation59_spill] sm:$0xff]  ;;  %v5080_v39 = vld [vmem:[#allocation60_spill] sm:$0xff] }
 0x4d9   : > { %3007 = vmatpush3.msra.mxu0 %v3842_v41  ;;  %3041 = vmatprep.subr.mxu1 %v3847_v44  ;;  %v3224_v41 = vld [vmem:[%s4835_s4 + $0xf8] sm:$0xff] }
 0x4da   : > { %3008 = vmatprep.subr.mxu0 %v3854_v45  ;;  %3042 = vmatpush3.msra.mxu1 %v3859_v46  ;;  %v3225_v44 = vld [vmem:[%s4835_s4 + $0x1f8] sm:$0xff] }
 0x4db   : > { %3009 = vmatpush3.msra.mxu0 %v3866_v3  ;;  %3043 = vmatprep.subr.mxu1 %v3871_v47 }
 0x4dc   : > { %3010 = vmatprep.subr.mxu0 %v3878_v2  ;;  %3044 = vmatpush3.msra.mxu1 %v3883_v1 }
 0x4dd   : > { %3011 = vmatpush3.msra.mxu0 %v3890_v48  ;;  %3045 = vmatprep.subr.mxu1 %v3895_v54  ;;  %v3226_v48 = vld [vmem:[%s4835_s4 + $0x78] sm:$0xff]  ;;  %v3227_v54 = vld [vmem:[%s4835_s4 + $0xf0] sm:$0xff] }
 0x4de   : > { %3012 = vmatprep.subr.mxu0 %v3902_v55  ;;  %3046 = vmatpush3.msra.mxu1 %v3907_v8  ;;  %v3228_v55 = vld [vmem:[%s4835_s4 + $0x178] sm:$0xff]  ;;  %v3229_v8 = vld [vmem:[%s4835_s4 + $0x70] sm:$0xff] }
 0x4df   : > { %3013 = vmatpush3.msra.mxu0 %v3914_v62  ;;  %3047 = vmatprep.subr.mxu1 %v3919_v63  ;;  %v3230_v62 = vld [vmem:[%s4835_s4 + $0x1f0] sm:$0xff]  ;;  %v3231_v63 = vld [vmem:[%s4835_s4 + $0xe8] sm:$0xff] }
 0x4e0   : > { %3014 = vmatprep.subr.mxu0 %v3926_v5  ;;  %3048 = vmatpush3.msra.mxu1 %v3931_v12  ;;  %v3232_v5 = vld [vmem:[%s4835_s4 + $0x170] sm:$0xff]  ;;  %v3233_v12 = vld [vmem:[%s4835_s4 + $0x68] sm:$0xff] }
 0x4e1   : > { %3015 = vmatpush3.msra.mxu0 %v3938_v10  ;;  %3049 = vmatprep.subr.mxu1 %v3943_v11  ;;  %v3234_v10 = vld [vmem:[%s4835_s4 + $0x1e8] sm:$0xff]  ;;  %v3235_v11 = vld [vmem:[%s4835_s4 + $0xe0] sm:$0xff] }
 0x4e2   : > { %3016 = vmatprep.subr.mxu0 %v3950_v21  ;;  %3050 = vmatpush3.msra.mxu1 %v3955_v9  ;;  %v3236_v21 = vld [vmem:[%s4835_s4 + $0x168] sm:$0xff]  ;;  %v3237_v9 = vld [vmem:[%s4835_s4 + $0x60] sm:$0xff] }
 0x4e3   : > { %3017 = vmatpush3.msra.mxu0 %v3962_v4  ;;  %3051 = vmatprep.subr.mxu1 %v3967_v57  ;;  %v5059_v4 = vld [vmem:[#allocation39_spill] sm:$0xff]  ;;  %v5070_v57 = vld [vmem:[#allocation50_spill] sm:$0xff] }
 0x4e4   : > { %3018 = vmatprep.subr.mxu0 %v3974_v61  ;;  %3052 = vmatpush3.msra.mxu1 %v3979_v56  ;;  %v5060_v56 = vld [vmem:[#allocation40_spill] sm:$0xff]  ;;  %v5071_v61 = vld [vmem:[#allocation51_spill] sm:$0xff] }
 0x4e5   : > { %3019 = vmatpush3.msra.mxu0 %v3986_v0  ;;  %3053 = vmatprep.subr.mxu1 %v3991_v36  ;;  %v5061_v0 = vld [vmem:[#allocation41_spill] sm:$0xff]  ;;  %v5062_v36 = vld [vmem:[#allocation42_spill] sm:$0xff] }
 0x4e6   : > { %3020 = vmatprep.subr.mxu0 %v3998_v37  ;;  %3054 = vmatpush3.msra.mxu1 %v4003_v30  ;;  %v5063_v37 = vld [vmem:[#allocation43_spill] sm:$0xff]  ;;  %v5064_v30 = vld [vmem:[#allocation44_spill] sm:$0xff] }
 0x4e7   : > { %3021 = vmatpush3.msra.mxu0 %v4010_v25  ;;  %3055 = vmatprep.subr.mxu1 %v4015_v59  ;;  %v5065_v25 = vld [vmem:[#allocation45_spill] sm:$0xff]  ;;  %v5066_v59 = vld [vmem:[#allocation46_spill] sm:$0xff] }
 0x4e8   : > { %3022 = vmatprep.subr.mxu0 %v4022_v60  ;;  %3056 = vmatpush3.msra.mxu1 %v4027_v58  ;;  %v5067_v60 = vld [vmem:[#allocation47_spill] sm:$0xff]  ;;  %v5068_v58 = vld [vmem:[#allocation48_spill] sm:$0xff] }
 0x4e9   : > { %3023 = vmatpush3.msra.mxu0 %v4034_v53  ;;  %3057 = vmatprep.subr.mxu1 %v5059_v4  ;;  %v5069_v53 = vld [vmem:[#allocation49_spill] sm:$0xff]  ;;  %v3260_v4 = vld [vmem:[%s4835_s4 + $0x138] sm:$0xff] }
 0x4ea   : > { %3024 = vmatprep.subr.mxu0 %v5060_v56  ;;  %3058 = vmatpush3.msra.mxu1 %v5061_v0  ;;  %v3261_v56 = vld [vmem:[%s4835_s4 + $0x30] sm:$0xff] }
 0x4eb   : > { %3025 = vmatpush3.msra.mxu0 %v5062_v36  ;;  %3059 = vmatprep.subr.mxu1 %v5063_v37  ;;  %v3262_v0 = vld [vmem:[%s4835_s4 + $0x1b0] sm:$0xff] }
 0x4ec   : > { %3026 = vmatprep.subr.mxu0 %v5064_v30  ;;  %3060 = vmatpush3.msra.mxu1 %v5065_v25 }
 0x4ed   : > { %3027 = vmatpush3.msra.mxu0 %v5066_v59  ;;  %3061 = vmatprep.subr.mxu1 %v5067_v60 }
 0x4ee   : > { %3028 = vmatprep.subr.mxu0 %v5068_v58  ;;  %3062 = vmatpush3.msra.mxu1 %v5069_v53 }
 0x4ef   : > { %3029 = vmatpush3.msra.mxu0 %v5070_v57  ;;  %3063 = vmatprep.subr.mxu1 %v5071_v61 }
 0x4f0   : > { %3030 = vmatprep.subr.mxu0 %v5072_v22  ;;  %3064 = vmatpush3.msra.mxu1 %v5073_v23 }
 0x4f1   : > { %3031 = vmatpush3.msra.mxu0 %v5074_v24  ;;  %3065 = vmatprep.subr.mxu1 %v5075_v26 }
 0x4f2   : > { %3032 = vmatprep.subr.mxu0 %v5076_v27  ;;  %3066 = vmatpush3.msra.mxu1 %v5077_v28 }
 0x4f3   : > { %3033 = vmatpush3.msra.mxu0 %v5078_v29  ;;  %3067 = vmatprep.subr.mxu1 %v5079_v38 }
 0x4f4   : > { %3068 = vmatpush3.msra.mxu1 %v5080_v39  ;;  %3072 = vmatprep.subr.mxu0 %v3224_v41  ;;  %v3263_v41 = vld [vmem:[%s4835_s4 + $0xa8] sm:$0xff] }
 0x4f5   : > { %3107 = vmatprep.subr.mxu1 %v3225_v44  ;;  %v3264_v44 = vld [vmem:[%s4835_s4 + $0x130] sm:$0xff] }
 0x593   : > { %v4577_v45 = vpop.f32.mrf.mxu0 }
 0x594   : > { %v4579_v46 = vpop.f32.mrf.mxu1 }
 0x595   : > { %v4581_v3 = vpop.f32.mrf.mxu0 }
 0x596   : > { %v2119_v47 = vmul.f32 %v4581_v3, %v4581_v3  ;;  %v4585_v2 = vpop.f32.mrf.mxu1  ;;  %2042 = vmatprep.mubr.f32.mxu0 %v4581_v3 }
 0x597   : > { %v2121_v1 = vmul.f32 %v4585_v2, %v4585_v2  ;;  %2043 = vmatmul.mubr.f32.vlgmr.msra.gmra.mxu0 %v4577_v45  ;;  %2112 = vmatprep.mubr.f32.mxu1 %v4585_v2 }
 0x598   : > { %3073 = vmatpush3.msra.mxu0 %v3226_v48  ;;  %2113 = vmatmul.mubr.f32.vlgmr.msra.gmra.mxu1 %v4579_v46  ;;  %v3267_v48 = vld [vmem:[%s4835_s4 + $0xa0] sm:$0xff] }
 0x599   : > { %3074 = vmatprep.subr.mxu0 %v3227_v54  ;;  %2186 = vmatprep.mubr.f32.mxu0 %v2119_v47  ;;  %v3265_v47 = vld [vmem:[%s4835_s4 + $0x28] sm:$0xff] }
 0x59a   : > { %3108 = vmatpush3.msra.mxu1 %v3228_v55  ;;  %3075 = vmatpush3.msra.mxu0 %v3229_v8  ;;  %v3268_v54 = vld [vmem:[%s4835_s4 + $0x128] sm:$0xff]  ;;  %v5085_v8 = vld [vmem:[#allocation64_spill] sm:$0xff] }
 0x59b   : > { %3109 = vmatprep.subr.mxu1 %v3230_v62  ;;  %2256 = vmatprep.mubr.f32.mxu1 %v2121_v1  ;;  %v3266_v1 = vld [vmem:[%s4835_s4 + $0x1a8] sm:$0xff] }
 0x59c   : > { %3076 = vmatprep.subr.mxu0 %v3231_v63  ;;  %3110 = vmatpush3.msra.mxu1 %v3232_v5  ;;  %v5086_v62 = vld [vmem:[#allocation62_spill] sm:$0xff] }
 0x59d   : > { %3077 = vmatpush3.msra.mxu0 %v3233_v12  ;;  %3111 = vmatprep.subr.mxu1 %v3234_v10 }
 0x59e   : > { %3078 = vmatprep.subr.mxu0 %v3235_v11  ;;  %3112 = vmatpush3.msra.mxu1 %v3236_v21 }
 0x59f   : > { %3079 = vmatpush3.msra.mxu0 %v3237_v9  ;;  %3113 = vmatprep.subr.mxu1 %v3238_v50 }
 0x5a0   : > { %3080 = vmatprep.subr.mxu0 %v3239_v20  ;;  %3114 = vmatpush3.msra.mxu1 %v3240_v13  ;;  %v2411_v13 = vpop.permute.xlu1 %2410 }
 0x5a1   : > { %3081 = vmatpush3.msra.mxu0 %v3241_v40  ;;  %3115 = vmatprep.subr.mxu1 %v3242_v31 }
 0x5a2   : > { %3082 = vmatprep.subr.mxu0 %v3243_v35  ;;  %3116 = vmatpush3.msra.mxu1 %v3244_v33  ;;  %v2419_v35 = vpop.permute.xlu0 %2418 }
 0x5a3   : > { %3083 = vmatpush3.msra.mxu0 %v3245_v42  ;;  %3117 = vmatprep.subr.mxu1 %v3246_v7 }
 0x5a4   : > { %3084 = vmatprep.subr.mxu0 %v3247_v18  ;;  %3118 = vmatpush3.msra.mxu1 %v3248_v51 }
 0x5a5   : > { %3085 = vmatpush3.msra.mxu0 %v3249_v15  ;;  %3119 = vmatprep.subr.mxu1 %v3250_v19 }
 0x5a6   : > { %3086 = vmatprep.subr.mxu0 %v3251_v49  ;;  %3120 = vmatpush3.msra.mxu1 %v3252_v16 }
 0x5a7   : > { %3087 = vmatpush3.msra.mxu0 %v3253_v17  ;;  %3121 = vmatprep.subr.mxu1 %v3254_v43 }
 0x5a8   : > { %3088 = vmatprep.subr.mxu0 %v3255_v34  ;;  %3122 = vmatpush3.msra.mxu1 %v3256_v32 }
 0x5a9   : > { %3089 = vmatpush3.msra.mxu0 %v3257_v14  ;;  %3123 = vmatprep.subr.mxu1 %v3258_v52 }
 0x5aa   : > { %3090 = vmatprep.subr.mxu0 %v3259_v6  ;;  %3124 = vmatpush3.msra.mxu1 %v3260_v4  ;;  %v3269_v6 = vld [vmem:[%s3460_s14] sm:$0xff] }
 0x5ab   : > { %3091 = vmatpush3.msra.mxu0 %v3261_v56  ;;  %3125 = vmatprep.subr.mxu1 %v3262_v0  ;;  %v3270_v56 = vld [vmem:[%s3460_s14 + $0x10] sm:$0xff] }
 0x5ac   : > { %3092 = vmatprep.subr.mxu0 %v3263_v41  ;;  %3126 = vmatpush3.msra.mxu1 %v3264_v44 }
 0x5ad   : > { %3093 = vmatpush3.msra.mxu0 %v3265_v47  ;;  %3127 = vmatprep.subr.mxu1 %v3266_v1  ;;  %v3272_v47 = vld [vmem:[%s3460_s14 + $0x18] sm:$0xff] }
 0x5ae   : > { %3094 = vmatprep.subr.mxu0 %v3267_v48  ;;  %3128 = vmatpush3.msra.mxu1 %v3268_v54 }
 0x5af   : > { %3095 = vmatpush3.msra.mxu0 %v5062_v36  ;;  %3129 = vmatprep.subr.mxu1 %v5063_v37  ;;  %v2118_v36 = vmul.f32 %v4577_v45, %v4577_v45  ;;  %v2120_v37 = vmul.f32 %v4579_v46, %v4579_v46 }
 0x5b0   : > { %3096 = vmatprep.subr.mxu0 %v5064_v30  ;;  %3130 = vmatpush3.msra.mxu1 %v5065_v25  ;;  %v5081_v30 = vmov 0.0  }
 0x5b1   : > { %3097 = vmatpush3.msra.mxu0 %v5066_v59  ;;  %3131 = vmatprep.subr.mxu1 %v5067_v60 }
 0x5b2   : > { %3098 = vmatprep.subr.mxu0 %v5068_v58  ;;  %3132 = vmatpush3.msra.mxu1 %v5069_v53 }
 0x5b3   : > { %3099 = vmatpush3.msra.mxu0 %v5070_v57  ;;  %3133 = vmatprep.subr.mxu1 %v5071_v61 }
 0x5b4   : > { %3100 = vmatprep.subr.mxu0 %v5072_v22  ;;  %3134 = vmatpush3.msra.mxu1 %v5073_v23  ;;  %v5082_v22 = vld [vmem:[#allocation61_spill] sm:$0xff]  ;;  %v5083_v23 = vld [vmem:[#allocation63_spill] sm:$0xff] }
 0x5b5   : > { %3101 = vmatpush3.msra.mxu0 %v5074_v24  ;;  %3135 = vmatprep.subr.mxu1 %v5075_v26  ;;  %v5084_v24 = vld [vmem:[#allocation5_spill] sm:$0xff] }
 0x5b6   : > { %3102 = vmatprep.subr.mxu0 %v5076_v27  ;;  %3136 = vmatpush3.msra.mxu1 %v5077_v28 }
 0x5b7   : > { %3103 = vmatpush3.msra.mxu0 %v5078_v29  ;;  %3137 = vmatprep.subr.mxu1 %v5079_v38 }
 0x5b8   : > { %2187 = vmatmul.mubr.f32.vlgmr.msra.gmra.mxu0 %v2118_v36  ;;  %3138 = vmatpush3.msra.mxu1 %v5080_v39 }
 0x5b9   : > { %2257 = vmatmul.mubr.f32.vlgmr.msra.gmra.mxu1 %v2120_v37  ;;  %3156 = vmatprep.subr.mxu0 %v5081_v30 }
 0x5ba   : > { %3158 = vmatprep.mubr.msk.f32.mxu0 %vm3344_vm9, %v5081_v30  ;;  %3161 = vmatprep.subr.mxu1 %v5081_v30 }
 0x5bb   : > { %3163 = vmatprep.mubr.msk.f32.mxu1 %vm3344_vm9, %v5081_v30 }
 0x657   : > { %v3034_v25 = vpop.f32.mrf.mxu0 }
 0x658   : > { %v3069_v59 = vpop.f32.mrf.mxu1 }
 0x659   : > { %v3035_v60 = vpop.f32.mrf.mxu0 }
 0x65a   : > { %v3036_v58 = vadd.f32 %v3035_v60, %v3034_v25  ;;  %v3070_v53 = vpop.f32.mrf.mxu1 }
 0x65b   : > { %v3071_v57 = vadd.f32 %v3070_v53, %v3069_v59 }
 0x65d   : > { %v2115_v61 = vadd.f32 %v3071_v57, %v3036_v58 }
 0x65f   : > { %3157 = vmatpush3.msra.mxu0 %v2115_v61 }
 0x660   : > { %3159 = vmatmul.mubr.msk.f32.vlgmr.msra.gmra.mxu0 %vm1209_vm10, %v5082_v22  ;;  %2840 = vmatprep.subr.msk.mxu0 %vm1396_vm11, %v5083_v23 }
 0x661   : > { %2841 = vmatpush1.msk.msra.mxu0 %vm1396_vm11, %v5084_v24  ;;  %2489 = vmatprep.mubr.f32.mxu0 %v5081_v30 }
 0x662   : > { %2846 = vmatprep.subr.msk.mxu0 %vm1396_vm11, %v5083_v23 }
 0x678   : > { %v3104_v26 = vpop.f32.mrf.mxu0 }
 0x679   : > { %v3139_v27 = vpop.f32.mrf.mxu1 }
 0x67a   : > { %v3105_v28 = vpop.f32.mrf.mxu0 }
 0x67b   : > { %v3106_v29 = vadd.f32 %v3105_v28, %v3104_v26  ;;  %v3140_v38 = vpop.f32.mrf.mxu1 }
 0x67c   : > { %v3141_v39 = vadd.f32 %v3140_v38, %v3139_v27 }
 0x67e   : > { %v2259_v55 = vadd.f32 %v3141_v39, %v3106_v29 }
 0x680   : > { %3162 = vmatpush3.msra.mxu1 %v2259_v55 }
 0x681   : > { %3164 = vmatmul.mubr.msk.f32.vlgmr.msra.gmra.mxu1 %vm1209_vm10, %v5082_v22  ;;  %2843 = vmatprep.subr.msk.mxu1 %vm1396_vm11, %v5085_v8 }
 0x682   : > { %2844 = vmatpush1.msk.msra.mxu1 %vm1396_vm11, %v5086_v62  ;;  %2560 = vmatprep.mubr.f32.mxu1 %v5081_v30 }
 0x683   : > { %2849 = vmatprep.subr.msk.mxu1 %vm1396_vm11, %v5085_v8 }
 0x720   : > { %v2328_v63 = vpop.f32.mrf.mxu0 }
 0x721   : > { %v2402_v12 = vmul.f32 %v2328_v63, %v2328_v63 }
 0x722   : > { %v3160_v5 = vpop.f32.mrf.mxu0 }
 0x741   : > { %v2398_v10 = vpop.f32.mrf.mxu1 }
 0x742   : > { %v2403_v11 = vsub.f32 %v2398_v10, %v2402_v12 }
 0x743   : > { %v3165_v21 = vpop.f32.mrf.mxu1 }
 0x744   : > { %v2404_v9 = vmax.f32 %v2403_v11, 0.0 }
 0x746   : > { %v2405_v50 = vadd.f32 1e-05, %v2404_v9 }
 0x748   : > { %3222 = vrsqrt.f32 %v2405_v50 }
 0x755   : > { %v3223_v20 = vpop.eup %3222 }
 0x756   : > { %v2413_v40 = vmul.f32 %v3223_v20, %v2411_v13 }
 0x758   : > { %2842 = vmatmul.mubr.msk.f32.vlgmr.msra.gmra.mxu0 %vm1392_vm12, %v2413_v40  ;;  %2845 = vmatmul.mubr.msk.f32.vlgmr.msra.gmra.mxu1 %vm1392_vm12, %v2413_v40  ;;  %v2415_v31 = vmul.f32 %v2413_v40, %v2328_v63 }
 0x759   : > { %2847 = vmatpush1.msk.msra.mxu0 %vm1396_vm11, %v5084_v24  ;;  %2638 = vmatprep.mubr.f32.mxu0 %v5081_v30 }
 0x75a   : > { %2850 = vmatpush1.msk.msra.mxu1 %vm1396_vm11, %v5086_v62  ;;  %2709 = vmatprep.mubr.f32.mxu1 %v5081_v30  ;;  %v2421_v33 = vsub.f32 %v2419_v35, %v2415_v31 }
 0x75c   : > { %2848 = vmatmul.mubr.msk.f32.vlgmr.msra.gmra.mxu0 %vm1392_vm12, %v2421_v33  ;;  %2851 = vmatmul.mubr.msk.f32.vlgmr.msra.gmra.mxu1 %vm1392_vm12, %v2421_v33 }
 0x818   : > { %v2491_v42 = vpop.f32.mrf.mxu0  ;;  %v2562_v7 = vpop.f32.mrf.mxu1 }
 0x819   : > { %v2567_v15 = vmul.f32 %v2491_v42, %v4577_v45  ;;  %v2569_v19 = vmul.f32 %v2562_v7, %v4579_v46 }
 0x81a   : > { %v2493_v18 = vpop.f32.mrf.mxu0  ;;  %v2564_v51 = vpop.f32.mrf.mxu1 }
 0x81b   : > { %v2568_v17 = vmul.f32 %v2493_v18, %v4581_v3  ;;  %v2570_v43 = vmul.f32 %v2564_v51, %v4585_v2  ;;  %v3271_v2 = vld [vmem:[%s3460_s14 + $0x8] sm:$0xff]  ;;  %s3347_s14 = smov [#allocation2]  }
 0x81c   : > { %v2640_v49 = vpop.f32.mrf.mxu0  ;;  %v2711_v16 = vpop.f32.mrf.mxu1  ;;  %s3277_s24 = sshll.u32 %s3347_s14, 4  ;;  %s3278_s24 = int_to_ptr.vmem [resolvable:$false] %s3277_s24 }
 0x81d   : > { %v2716_v34 = vadd.f32 %v2640_v49, %v2567_v15  ;;  %v2718_v32 = vadd.f32 %v2711_v16, %v2569_v19  ;;  %s3279_s12 = scalar_lea.vmem %s3278_s24, 1024  ;;  %p3280_p0 = scmp.lt.s32.totalorder %s2748_s29, %s3278_s24 }
 0x81e   : > { %v2642_v14 = vpop.f32.mrf.mxu0  ;;  %v2713_v52 = vpop.f32.mrf.mxu1  ;;  %p3281_p1 = scmp.lt.s32.totalorder %s3279_s12, %s3273_s22 }
 0x81f   : > { %v2720_v4 = vadd.f32 %v3269_v6, %v2716_v34  ;;  %v2722_v0 = vadd.f32 %v3270_v56, %v2718_v32  ;;  %v2717_v45 = vadd.f32 %v2642_v14, %v2568_v17  ;;  %v2719_v41 = vadd.f32 %v2713_v52, %v2570_v43 }
 0x820   : > { %p3282_p2 = por %p3281_p1, %p3280_p0 }
 0x821   : > { %v2724_v46 = vmax.f32 %v2720_v4, 0.0  ;;  %v2726_v3 = vmax.f32 %v2722_v0, 0.0  ;;  %v2721_v44 = vadd.f32 %v3271_v2, %v2717_v45  ;;  %v2723_v1 = vadd.f32 %v3272_v47, %v2719_v41 }
 0x822   : > { %p3283_p3 = pnand %p3282_p2, %p3276_p13 }
 0x823   : > { %2728 = vst [vmem:[%s380_s13] sm:$0xff] %v2724_v46  ;;  %2730 = vst [vmem:[%s380_s13 + $0x10] sm:$0xff] %v2726_v3  ;;  %v2725_v48 = vmax.f32 %v2721_v44, 0.0  ;;  %v2727_v54 = vmax.f32 %v2723_v1, 0.0 }
 0x825   : > { %2729 = vst [vmem:[%s380_s13 + $0x8] sm:$0xff] %v2725_v48  ;;  %2731 = vst [vmem:[%s380_s13 + $0x18] sm:$0xff] %v2727_v54 }
 0x826   : > { %3286 = shalt.err (!%p3283_p3)
}
 0x827   : > { %s3287_s0 = scalar_lea.hbm %s4794_s16, 512  ;;  %s3291_s30 = scalar_lea.hbm %s4842_s11, 1024 }
 0x828   : > { %p3288_p4 = scmp.ne.s32.totalorder %s4794_s16, %s3287_s0  ;;  %p3292_p9 = scmp.lt.s32.totalorder %s4794_s16, %s4842_s11 }
 0x829   : > { %p3293_p10 = scmp.lt.s32.totalorder %s3291_s30, %s3287_s0 }
 0x82a   : > { %p3289_p7 = pnand %p3288_p4, %p3446_p5 }
 0x82b   : > { %p3294_p11 = por %p3293_p10, %p3292_p9 }
 0x82c   : > { %p3290_p8 = pneg %p3289_p7 }
 0x82e   : > { %p3295_p12 = pnand %p3294_p11, %p3290_p8 }
 0x830   : > { %3298 = shalt.err (!%p3295_p12)
}
 0x831   : > { %3166 = dma.vmem_to_hbm [thread:$0]  (%p3446_p5), %s2748_s29, 512, %s4794_s16, %s2733_s21  }
 0x832 PF: > { %p3172_p13 = scmp.ge.s32.totalorder %s3333_s20, 2  ;;  %s2759_s22 = sand.u32 1, %s3321_s17  }
 0x833   : > { %s2760_s24 = scalar_lea.sflag [#allocation3], %s2759_s22 }
 0x834   : > { %p3169_p0 = pnand %p3172_p13, %p3450_p6 }
 0x836   : > { %p3170_p1 = pneg %p3169_p0 }
 0x838   : > { %3316 = dma.done.wait (%p3170_p1), %s2760_s24, 512  }
 0x839   : > { %3318 = vsyncadd (%p3170_p1), %s2760_s24, 4294966784  ;;  %p21_p2 = scmp.ge.s32.totalorder %s3433_s23, 4   ;;  %s5087_s17 = smov %s3325_s18 }
 0x83a   : > { %s5088_s18 = smov %s3329_s19  ;;  %s5089_s19 = smov %s3444_s26 }
 0x83b   : > { %s5090_s20 = smov %s3433_s23  ;;  %23 = sbr.rel (!%p21_p2) target bundleno = 5 (0x5), region = 106 }
 0x840   :  { %2765 = vsyncpa [#allocation3], 1 }
 0x841   :  { %2767 = vsyncpa [#allocation3 + $0x1], 1 }

</bundles_post_ra>
